<compile_context>
chip_gen: v7x
topology: tpu7x:2x2x1
jax: 0.10.0
libtpu: 0.0.40
codegen_flags: <defaults>
</compile_context>

<pallas_src>
import jax
import jax.numpy as jnp
from jax import lax
from jax.experimental import pallas as pl
from jax.experimental.pallas import tpu as pltpu


# ------------------------------ Pallas kernel ------------------------------ #

def make_audio_lstm_kernel(num_layers, hidden_dim, seq_len, batch):
    """Builds the fused kernel for static (layers, hidden, T, B)."""
    H = hidden_dim
    T = seq_len
    B = batch

    def kernel(*refs):
        # refs = [x, (w_ih_cat, b_cat, whh_stack) * num_layers, fc_w, fc_b,
        #         out, xw_scratch, act_scratch]
        x_ref = refs[0]
        n_lw = 3 * num_layers
        layer_refs = refs[1:1 + n_lw]
        fc_w_ref = refs[1 + n_lw]
        fc_b_ref = refs[2 + n_lw]
        out_ref = refs[3 + n_lw]
        xw_ref = refs[4 + n_lw]      # (T*B, 8H): lanes [:4H] fwd, [4H:] bwd pre-acts
        act_ref = refs[5 + n_lw]     # (T*B, 2H): lanes [:H] fwd hidden, [H:] bwd hidden

        # Block-diagonal mask so a single (2B, 2H) @ (2H, 4H) matmul computes
        # both directions' recurrent contributions.  Hoisted (computed once).
        row_ids = lax.broadcasted_iota(jnp.int32, (2 * B, 2 * H), 0)
        col_ids = lax.broadcasted_iota(jnp.int32, (2 * B, 2 * H), 1)
        diag_mask = ((row_ids < B) == (col_ids < H)).astype(jnp.float32)

        # Full unroll only for tiny static T; partial unroll keeps vreg
        # pressure bounded for production sequence lengths.
        rec_unroll = True if T <= 16 else 4

        for layer in range(num_layers):
            wih_ref, b_ref, whh_ref = layer_refs[3 * layer:3 * layer + 3]

            # ---- Whole-sequence input projection: ONE matmul per layer,
            #      fwd + bwd fused in the 8H columns, off the critical path.
            src = x_ref[...] if layer == 0 else act_ref[...]
            xw_ref[...] = (jnp.dot(src, wih_ref[...],
                                   preferred_element_type=jnp.float32)
                           + b_ref[...])

            whh = whh_ref[...]       # (2H, 4H) = [whh_f ; whh_b]

            # ---- Recurrence: fwd + bwd state stacked along sublanes so each
            #      step is ONE matmul, ONE sigmoid slab, ONE tanh slab.
            def rec_step(t, carry):
                h_s, c_s = carry                           # (2B, 2H), (2B, H)
                rt = T - 1 - t
                xw_f = xw_ref[pl.ds(t * B, B), :4 * H]     # (B, 4H) fwd @ time t
                xw_b = xw_ref[pl.ds(rt * B, B), 4 * H:]    # (B, 4H) bwd @ time rt
                g = (jnp.concatenate([xw_f, xw_b], axis=0)
                     + jnp.dot(h_s, whh, preferred_element_type=jnp.float32))
                # Gate columns pre-permuted to (i, f, o, g).
                s = jax.nn.sigmoid(g[:, :3 * H])           # i | f | o   (2B, 3H)
                gg = jnp.tanh(g[:, 3 * H:])                # g           (2B, H)
                c_s = s[:, H:2 * H] * c_s + s[:, :H] * gg
                h_new = s[:, 2 * H:] * jnp.tanh(c_s)       # (2B, H)
                act_ref[pl.ds(t * B, B), :H] = h_new[:B]   # fwd hidden @ t
                act_ref[pl.ds(rt * B, B), H:] = h_new[B:]  # bwd hidden @ rt
                # Rebuild block-diagonal stacked state for the next step.
                h_s = jnp.concatenate([h_new, h_new], axis=1) * diag_mask
                return (h_s, c_s)

            h0 = jnp.zeros((2 * B, 2 * H), jnp.float32)
            c0 = jnp.zeros((2 * B, H), jnp.float32)
            lax.fori_loop(0, T, rec_step, (h0, c0), unroll=rec_unroll)

        # ---- FC head on the last timestep: act rows (T-1)*B hold
        #      [h_fwd(T-1) | h_bwd(T-1)], matching torch out[:, -1].
        feat = act_ref[(T - 1) * B:T * B, :]               # (B, 2H), static slice
        out_ref[...] = (jnp.dot(feat, fc_w_ref[...],
                                preferred_element_type=jnp.float32)
                        + fc_b_ref[...])

    return kernel


# --------------------------------- Wrapper ---------------------------------- #

def audio_lstm_forward(x, kp):
    """Forward pass. x: (B, T, input_dim) batch_first; kp from prepare_pallas_params."""
    B, T, D = x.shape
    # Time-major, flattened to a lane-dense 2D slab so the kernel's projection
    # is a single (T*B, d_in) matmul.
    x_flat = jnp.transpose(x, (1, 0, 2)).reshape(T * B, D)
    num_layers = len(kp["layers"])
    H = kp["layers"][0]["whh_stack"].shape[0] // 2
    O = kp["fc_w_t"].shape[1]

    args = [x_flat]
    for lp in kp["layers"]:
        args += [lp["w_ih_cat"], lp["b_cat"], lp["whh_stack"]]
    args += [kp["fc_w_t"], kp["fc_b"]]

    return pl.pallas_call(
        make_audio_lstm_kernel(num_layers, H, T, B),
        out_shape=jax.ShapeDtypeStruct((B, O), jnp.float32),
        in_specs=[pl.BlockSpec(memory_space=pltpu.MemorySpace.VMEM)] * len(args),
        out_specs=pl.BlockSpec(memory_space=pltpu.MemorySpace.VMEM),
        scratch_shapes=[
            pltpu.VMEM((T * B, 8 * H), jnp.float32),   # xw: fused gate pre-activations
            pltpu.VMEM((T * B, 2 * H), jnp.float32),   # act: [fwd | bwd] hidden states
        ],
    )(*args)


# --------------------------- Parameter preparation --------------------------- #

def make_params(input_dim, hidden_dim, num_layers, output_dim, key):
    """Deterministic synthetic parameters in PyTorch nn.LSTM / nn.Linear layout."""
    scale = 1.0 / jnp.sqrt(hidden_dim)
    layers = []
    for l in range(num_layers):
        d_in = input_dim if l == 0 else 2 * hidden_dim
        dirs = {}
        for dname in ("fwd", "bwd"):
            key, k1, k2, k3, k4 = jax.random.split(key, 5)
            w_ih = jax.random.uniform(k1, (4 * hidden_dim, d_in),
                                      jnp.float32, -scale, scale)
            w_hh = jax.random.uniform(k2, (4 * hidden_dim, hidden_dim),
                                      jnp.float32, -scale, scale)
            b_ih = jax.random.uniform(k3, (4 * hidden_dim,),
                                      jnp.float32, -scale, scale)
            b_hh = jax.random.uniform(k4, (4 * hidden_dim,),
                                      jnp.float32, -scale, scale)
            dirs[dname] = (w_ih, w_hh, b_ih, b_hh)
        layers.append(dirs)
    key, kw, kb = jax.random.split(key, 3)
    fscale = 1.0 / jnp.sqrt(2 * hidden_dim)
    fc_w = jax.random.uniform(kw, (output_dim, 2 * hidden_dim),
                              jnp.float32, -fscale, fscale)
    fc_b = jax.random.uniform(kb, (output_dim,), jnp.float32, -fscale, fscale)
    return {"layers": layers, "fc_w": fc_w, "fc_b": fc_b}


def _reorder_ifog_rows(w):
    """Permute PyTorch gate-major rows from (i, f, g, o) to (i, f, o, g)."""
    H = w.shape[0] // 4
    return jnp.concatenate([w[:2 * H], w[3 * H:], w[2 * H:3 * H]], axis=0)


def prepare_pallas_params(raw):
    """Transpose / permute / fuse PyTorch-layout params for the Pallas kernel."""
    layers = []
    for lp in raw["layers"]:
        wih_f, whh_f, bih_f, bhh_f = lp["fwd"]
        wih_b, whh_b, bih_b, bhh_b = lp["bwd"]
        wih_f_t = _reorder_ifog_rows(wih_f).T                       # (d_in, 4H)
        wih_b_t = _reorder_ifog_rows(wih_b).T                       # (d_in, 4H)
        b_f = _reorder_ifog_rows(bih_f + bhh_f)                     # (4H,)
        b_b = _reorder_ifog_rows(bih_b + bhh_b)                     # (4H,)
        layers.append({
            "w_ih_cat": jnp.concatenate([wih_f_t, wih_b_t], axis=1),   # (d_in, 8H)
            "b_cat": jnp.concatenate([b_f, b_b])[None, :],             # (1, 8H)
            # Stacked recurrent weight for the fused fwd+bwd matmul: (2H, 4H)
            "whh_stack": jnp.concatenate(
                [_reorder_ifog_rows(whh_f).T, _reorder_ifog_rows(whh_b).T], axis=0),
        })
    return {
        "layers": layers,
        "fc_w_t": raw["fc_w"].T,                                       # (2H, O)
        "fc_b": raw["fc_b"][None, :],                                  # (1, O)
    }


# ----------------------------- Pure-JAX reference ---------------------------- #

def _ref_lstm_dir(x_tm, w_ih, w_hh, b_ih, b_hh):
    T, B, _ = x_tm.shape
    H = w_hh.shape[1]

    def step(carry, x_t):
        h, c = carry
        gates = x_t @ w_ih.T + h @ w_hh.T + b_ih + b_hh
        i_g = jax.nn.sigmoid(gates[:, 0 * H:1 * H])
        f_g = jax.nn.sigmoid(gates[:, 1 * H:2 * H])
        g_g = jnp.tanh(gates[:, 2 * H:3 * H])
        o_g = jax.nn.sigmoid(gates[:, 3 * H:4 * H])
        c_new = f_g * c + i_g * g_g
        h_new = o_g * jnp.tanh(c_new)
        return (h_new, c_new), h_new

    init = (jnp.zeros((B, H), jnp.float32), jnp.zeros((B, H), jnp.float32))
    _, hs = lax.scan(step, init, x_tm)
    return hs


def reference_forward(x, raw):
    x_tm = jnp.transpose(x, (1, 0, 2))
    layer_in = x_tm
    for lp in raw["layers"]:
        h_fwd = _ref_lstm_dir(layer_in, *lp["fwd"])
        h_bwd = jnp.flip(_ref_lstm_dir(jnp.flip(layer_in, 0), *lp["bwd"]), 0)
        layer_in = jnp.concatenate([h_fwd, h_bwd], axis=-1)
    feat = layer_in[-1]
    return feat @ raw["fc_w"].T + raw["fc_b"]


# ------------------------------------ Main ----------------------------------- #

if __name__ == "__main__":
    B, T = 2, 8
    input_dim, hidden_dim, num_layers, output_dim = 16, 32, 2, 32

    key = jax.random.PRNGKey(0)
    key, kp, kx = jax.random.split(key, 3)
    raw = make_params(input_dim, hidden_dim, num_layers, output_dim, kp)
    kparams = prepare_pallas_params(raw)
    x = jax.random.normal(kx, (B, T, input_dim), jnp.float32)

    out = jax.jit(audio_lstm_forward)(x, kparams)
    out = jax.block_until_ready(out)

    ref = reference_forward(x, raw)
    assert out.shape == (B, output_dim)
    assert jnp.allclose(out, ref, atol=1e-4, rtol=1e-4), "mismatch vs JAX reference"

    print("KERNEL_OK")
</pallas_src>

<mosaic_0001>
module attributes {stable_mosaic.version = 11 : i64} {
  func.func @kernel(%arg0: memref<16x16xf32, #tpu.memory_space<vmem>>, %arg1: memref<16x256xf32, #tpu.memory_space<vmem>>, %arg2: memref<1x256xf32, #tpu.memory_space<vmem>>, %arg3: memref<64x128xf32, #tpu.memory_space<vmem>>, %arg4: memref<64x256xf32, #tpu.memory_space<vmem>>, %arg5: memref<1x256xf32, #tpu.memory_space<vmem>>, %arg6: memref<64x128xf32, #tpu.memory_space<vmem>>, %arg7: memref<64x32xf32, #tpu.memory_space<vmem>>, %arg8: memref<1x32xf32, #tpu.memory_space<vmem>>, %arg9: memref<2x32xf32, #tpu.memory_space<vmem>>, %arg10: memref<16x256xf32, #tpu.memory_space<vmem>>, %arg11: memref<16x64xf32, #tpu.memory_space<vmem>>) attributes {dimension_semantics = [], scalar_prefetch = 0 : i64, scratch_operands = 2 : i64, tpu.core_type = #tpu.core_type<tc>} {
    %0 = tpu.iota {dimensions = array<i32: 0>} : vector<4x64xi32>
    %1 = tpu.iota {dimensions = array<i32: 1>} : vector<4x64xi32>
    %c2_i32 = arith.constant 2 : i32
    %2 = vector.broadcast %c2_i32 : i32 to vector<4x64xi32>
    %3 = arith.cmpi slt, %0, %2 : vector<4x64xi32>
    %c32_i32 = arith.constant 32 : i32
    %4 = vector.broadcast %c32_i32 : i32 to vector<4x64xi32>
    %5 = arith.cmpi slt, %1, %4 : vector<4x64xi32>
    %6 = arith.xori %3, %5 : vector<4x64xi1>
    %cst = arith.constant dense<true> : vector<4x64xi1>
    %7 = arith.xori %6, %cst : vector<4x64xi1>
    %8 = arith.extui %7 : vector<4x64xi1> to vector<4x64xi32>
    %9 = arith.sitofp %8 : vector<4x64xi32> to vector<4x64xf32>
    %c0 = arith.constant 0 : index
    %c0_0 = arith.constant 0 : index
    %10 = vector.load %arg0[%c0, %c0_0] : memref<16x16xf32, #tpu.memory_space<vmem>>, vector<16x16xf32>
    %c0_1 = arith.constant 0 : index
    %c0_2 = arith.constant 0 : index
    %11 = vector.load %arg1[%c0_1, %c0_2] : memref<16x256xf32, #tpu.memory_space<vmem>>, vector<16x256xf32>
    %cst_3 = arith.constant dense<0.000000e+00> : vector<16x256xf32>
    %12 = tpu.matmul %10, %11, %cst_3 {dimension_numbers = #tpu.dot_dimension_numbers<[1], [0], [0], [1], [0, 0, 1, 1], [], []>} : vector<16x16xf32>, vector<16x256xf32>, vector<16x256xf32> -> vector<16x256xf32>
    %c0_4 = arith.constant 0 : index
    %c0_5 = arith.constant 0 : index
    %13 = vector.load %arg2[%c0_4, %c0_5] : memref<1x256xf32, #tpu.memory_space<vmem>>, vector<1x256xf32>
    %14 = vector.broadcast %13 : vector<1x256xf32> to vector<16x256xf32>
    %15 = arith.addf %12, %14 : vector<16x256xf32>
    %c0_6 = arith.constant 0 : index
    %c0_7 = arith.constant 0 : index
    %16 = vector.load %arg10[%c0_6, %c0_7] : memref<16x256xf32, #tpu.memory_space<vmem>>, vector<16x256xf32>
    tpu.vector_store %arg10[%c0_6, %c0_7], %15 {strides = array<i32>} : memref<16x256xf32, #tpu.memory_space<vmem>>, vector<16x256xf32>,
    %c0_8 = arith.constant 0 : index
    %c0_9 = arith.constant 0 : index
    %17 = vector.load %arg3[%c0_8, %c0_9] : memref<64x128xf32, #tpu.memory_space<vmem>>, vector<64x128xf32>
    %cst_10 = arith.constant 0.000000e+00 : f32
    %18 = vector.broadcast %cst_10 : f32 to vector<4x64xf32>
    %cst_11 = arith.constant 0.000000e+00 : f32
    %19 = vector.broadcast %cst_11 : f32 to vector<4x32xf32>
    %c0_i32 = arith.constant 0 : i32
    %c7_i32 = arith.constant 7 : i32
    %20 = arith.subi %c7_i32, %c0_i32 : i32
    %c2_i32_12 = arith.constant 2 : i32
    %21 = arith.muli %c0_i32, %c2_i32_12 : i32
    %22 = arith.index_cast %21 : i32 to index
    %c0_13 = arith.constant 0 : index
    %23 = vector.load %arg10[%22, %c0_13] : memref<16x256xf32, #tpu.memory_space<vmem>>, vector<2x128xf32>
    %c2_i32_14 = arith.constant 2 : i32
    %24 = arith.muli %20, %c2_i32_14 : i32
    %25 = arith.index_cast %24 : i32 to index
    %c128 = arith.constant 128 : index
    %26 = vector.load %arg10[%25, %c128] : memref<16x256xf32, #tpu.memory_space<vmem>>, vector<2x128xf32>
    %27 = tpu.concatenate %23, %26 in 0 : vector<2x128xf32>, vector<2x128xf32> -> vector<4x128xf32>
    %cst_15 = arith.constant dense<0.000000e+00> : vector<4x128xf32>
    %28 = tpu.matmul %18, %17, %cst_15 {dimension_numbers = #tpu.dot_dimension_numbers<[1], [0], [0], [1], [0, 0, 1, 1], [], []>} : vector<4x64xf32>, vector<64x128xf32>, vector<4x128xf32> -> vector<4x128xf32>
    %29 = arith.addf %27, %28 : vector<4x128xf32>
    %30 = vector.extract_strided_slice %29 {offsets = [0, 0], sizes = [4, 96], strides = [1, 1]} : vector<4x128xf32> to vector<4x96xf32>
    %31 = arith.negf %30 : vector<4x96xf32>
    %32 = math.exp %31 : vector<4x96xf32>
    %cst_16 = arith.constant 1.000000e+00 : f32
    %33 = vector.broadcast %cst_16 : f32 to vector<4x96xf32>
    %34 = arith.addf %33, %32 : vector<4x96xf32>
    %35 = arith.divf %33, %34 : vector<4x96xf32>
    %36 = vector.extract_strided_slice %29 {offsets = [0, 96], sizes = [4, 32], strides = [1, 1]} : vector<4x128xf32> to vector<4x32xf32>
    %37 = math.tanh %36 : vector<4x32xf32>
    %38 = vector.extract_strided_slice %35 {offsets = [0, 32], sizes = [4, 32], strides = [1, 1]} : vector<4x96xf32> to vector<4x32xf32>
    %39 = arith.mulf %38, %19 : vector<4x32xf32>
    %40 = vector.extract_strided_slice %35 {offsets = [0, 0], sizes = [4, 32], strides = [1, 1]} : vector<4x96xf32> to vector<4x32xf32>
    %41 = arith.mulf %40, %37 : vector<4x32xf32>
    %42 = arith.addf %39, %41 : vector<4x32xf32>
    %43 = vector.extract_strided_slice %35 {offsets = [0, 64], sizes = [4, 32], strides = [1, 1]} : vector<4x96xf32> to vector<4x32xf32>
    %44 = math.tanh %42 : vector<4x32xf32>
    %45 = arith.mulf %43, %44 : vector<4x32xf32>
    %46 = vector.extract_strided_slice %45 {offsets = [0, 0], sizes = [2, 32], strides = [1, 1]} : vector<4x32xf32> to vector<2x32xf32>
    %c2_i32_17 = arith.constant 2 : i32
    %47 = arith.muli %c0_i32, %c2_i32_17 : i32
    %48 = arith.index_cast %47 : i32 to index
    %c0_18 = arith.constant 0 : index
    %49 = vector.load %arg11[%48, %c0_18] : memref<16x64xf32, #tpu.memory_space<vmem>>, vector<2x32xf32>
    tpu.vector_store %arg11[%48, %c0_18], %46 {strides = array<i32>} : memref<16x64xf32, #tpu.memory_space<vmem>>, vector<2x32xf32>,
    %50 = vector.extract_strided_slice %45 {offsets = [2, 0], sizes = [2, 32], strides = [1, 1]} : vector<4x32xf32> to vector<2x32xf32>
    %c2_i32_19 = arith.constant 2 : i32
    %51 = arith.muli %20, %c2_i32_19 : i32
    %52 = arith.index_cast %51 : i32 to index
    %c32 = arith.constant 32 : index
    %53 = vector.load %arg11[%52, %c32] : memref<16x64xf32, #tpu.memory_space<vmem>>, vector<2x32xf32>
    tpu.vector_store %arg11[%52, %c32], %50 {strides = array<i32>} : memref<16x64xf32, #tpu.memory_space<vmem>>, vector<2x32xf32>,
    %54 = tpu.concatenate %45, %45 in 1 : vector<4x32xf32>, vector<4x32xf32> -> vector<4x64xf32>
    %55 = arith.mulf %54, %9 : vector<4x64xf32>
    %c1_i32 = arith.constant 1 : i32
    %c7_i32_20 = arith.constant 7 : i32
    %56 = arith.subi %c7_i32_20, %c1_i32 : i32
    %c2_i32_21 = arith.constant 2 : i32
    %57 = arith.muli %c1_i32, %c2_i32_21 : i32
    %58 = arith.index_cast %57 : i32 to index
    %c0_22 = arith.constant 0 : index
    %59 = vector.load %arg10[%58, %c0_22] : memref<16x256xf32, #tpu.memory_space<vmem>>, vector<2x128xf32>
    %c2_i32_23 = arith.constant 2 : i32
    %60 = arith.muli %56, %c2_i32_23 : i32
    %61 = arith.index_cast %60 : i32 to index
    %c128_24 = arith.constant 128 : index
    %62 = vector.load %arg10[%61, %c128_24] : memref<16x256xf32, #tpu.memory_space<vmem>>, vector<2x128xf32>
    %63 = tpu.concatenate %59, %62 in 0 : vector<2x128xf32>, vector<2x128xf32> -> vector<4x128xf32>
    %cst_25 = arith.constant dense<0.000000e+00> : vector<4x128xf32>
    %64 = tpu.matmul %55, %17, %cst_25 {dimension_numbers = #tpu.dot_dimension_numbers<[1], [0], [0], [1], [0, 0, 1, 1], [], []>} : vector<4x64xf32>, vector<64x128xf32>, vector<4x128xf32> -> vector<4x128xf32>
    %65 = arith.addf %63, %64 : vector<4x128xf32>
    %66 = vector.extract_strided_slice %65 {offsets = [0, 0], sizes = [4, 96], strides = [1, 1]} : vector<4x128xf32> to vector<4x96xf32>
    %67 = arith.negf %66 : vector<4x96xf32>
    %68 = math.exp %67 : vector<4x96xf32>
    %cst_26 = arith.constant 1.000000e+00 : f32
    %69 = vector.broadcast %cst_26 : f32 to vector<4x96xf32>
    %70 = arith.addf %69, %68 : vector<4x96xf32>
    %71 = arith.divf %69, %70 : vector<4x96xf32>
    %72 = vector.extract_strided_slice %65 {offsets = [0, 96], sizes = [4, 32], strides = [1, 1]} : vector<4x128xf32> to vector<4x32xf32>
    %73 = math.tanh %72 : vector<4x32xf32>
    %74 = vector.extract_strided_slice %71 {offsets = [0, 32], sizes = [4, 32], strides = [1, 1]} : vector<4x96xf32> to vector<4x32xf32>
    %75 = arith.mulf %74, %42 : vector<4x32xf32>
    %76 = vector.extract_strided_slice %71 {offsets = [0, 0], sizes = [4, 32], strides = [1, 1]} : vector<4x96xf32> to vector<4x32xf32>
    %77 = arith.mulf %76, %73 : vector<4x32xf32>
    %78 = arith.addf %75, %77 : vector<4x32xf32>
    %79 = vector.extract_strided_slice %71 {offsets = [0, 64], sizes = [4, 32], strides = [1, 1]} : vector<4x96xf32> to vector<4x32xf32>
    %80 = math.tanh %78 : vector<4x32xf32>
    %81 = arith.mulf %79, %80 : vector<4x32xf32>
    %82 = vector.extract_strided_slice %81 {offsets = [0, 0], sizes = [2, 32], strides = [1, 1]} : vector<4x32xf32> to vector<2x32xf32>
    %c2_i32_27 = arith.constant 2 : i32
    %83 = arith.muli %c1_i32, %c2_i32_27 : i32
    %84 = arith.index_cast %83 : i32 to index
    %c0_28 = arith.constant 0 : index
    %85 = vector.load %arg11[%84, %c0_28] : memref<16x64xf32, #tpu.memory_space<vmem>>, vector<2x32xf32>
    tpu.vector_store %arg11[%84, %c0_28], %82 {strides = array<i32>} : memref<16x64xf32, #tpu.memory_space<vmem>>, vector<2x32xf32>,
    %86 = vector.extract_strided_slice %81 {offsets = [2, 0], sizes = [2, 32], strides = [1, 1]} : vector<4x32xf32> to vector<2x32xf32>
    %c2_i32_29 = arith.constant 2 : i32
    %87 = arith.muli %56, %c2_i32_29 : i32
    %88 = arith.index_cast %87 : i32 to index
    %c32_30 = arith.constant 32 : index
    %89 = vector.load %arg11[%88, %c32_30] : memref<16x64xf32, #tpu.memory_space<vmem>>, vector<2x32xf32>
    tpu.vector_store %arg11[%88, %c32_30], %86 {strides = array<i32>} : memref<16x64xf32, #tpu.memory_space<vmem>>, vector<2x32xf32>,
    %90 = tpu.concatenate %81, %81 in 1 : vector<4x32xf32>, vector<4x32xf32> -> vector<4x64xf32>
    %91 = arith.mulf %90, %9 : vector<4x64xf32>
    %c2_i32_31 = arith.constant 2 : i32
    %c7_i32_32 = arith.constant 7 : i32
    %92 = arith.subi %c7_i32_32, %c2_i32_31 : i32
    %c2_i32_33 = arith.constant 2 : i32
    %93 = arith.muli %c2_i32_31, %c2_i32_33 : i32
    %94 = arith.index_cast %93 : i32 to index
    %c0_34 = arith.constant 0 : index
    %95 = vector.load %arg10[%94, %c0_34] : memref<16x256xf32, #tpu.memory_space<vmem>>, vector<2x128xf32>
    %c2_i32_35 = arith.constant 2 : i32
    %96 = arith.muli %92, %c2_i32_35 : i32
    %97 = arith.index_cast %96 : i32 to index
    %c128_36 = arith.constant 128 : index
    %98 = vector.load %arg10[%97, %c128_36] : memref<16x256xf32, #tpu.memory_space<vmem>>, vector<2x128xf32>
    %99 = tpu.concatenate %95, %98 in 0 : vector<2x128xf32>, vector<2x128xf32> -> vector<4x128xf32>
    %cst_37 = arith.constant dense<0.000000e+00> : vector<4x128xf32>
    %100 = tpu.matmul %91, %17, %cst_37 {dimension_numbers = #tpu.dot_dimension_numbers<[1], [0], [0], [1], [0, 0, 1, 1], [], []>} : vector<4x64xf32>, vector<64x128xf32>, vector<4x128xf32> -> vector<4x128xf32>
    %101 = arith.addf %99, %100 : vector<4x128xf32>
    %102 = vector.extract_strided_slice %101 {offsets = [0, 0], sizes = [4, 96], strides = [1, 1]} : vector<4x128xf32> to vector<4x96xf32>
    %103 = arith.negf %102 : vector<4x96xf32>
    %104 = math.exp %103 : vector<4x96xf32>
    %cst_38 = arith.constant 1.000000e+00 : f32
    %105 = vector.broadcast %cst_38 : f32 to vector<4x96xf32>
    %106 = arith.addf %105, %104 : vector<4x96xf32>
    %107 = arith.divf %105, %106 : vector<4x96xf32>
    %108 = vector.extract_strided_slice %101 {offsets = [0, 96], sizes = [4, 32], strides = [1, 1]} : vector<4x128xf32> to vector<4x32xf32>
    %109 = math.tanh %108 : vector<4x32xf32>
    %110 = vector.extract_strided_slice %107 {offsets = [0, 32], sizes = [4, 32], strides = [1, 1]} : vector<4x96xf32> to vector<4x32xf32>
    %111 = arith.mulf %110, %78 : vector<4x32xf32>
    %112 = vector.extract_strided_slice %107 {offsets = [0, 0], sizes = [4, 32], strides = [1, 1]} : vector<4x96xf32> to vector<4x32xf32>
    %113 = arith.mulf %112, %109 : vector<4x32xf32>
    %114 = arith.addf %111, %113 : vector<4x32xf32>
    %115 = vector.extract_strided_slice %107 {offsets = [0, 64], sizes = [4, 32], strides = [1, 1]} : vector<4x96xf32> to vector<4x32xf32>
    %116 = math.tanh %114 : vector<4x32xf32>
    %117 = arith.mulf %115, %116 : vector<4x32xf32>
    %118 = vector.extract_strided_slice %117 {offsets = [0, 0], sizes = [2, 32], strides = [1, 1]} : vector<4x32xf32> to vector<2x32xf32>
    %c2_i32_39 = arith.constant 2 : i32
    %119 = arith.muli %c2_i32_31, %c2_i32_39 : i32
    %120 = arith.index_cast %119 : i32 to index
    %c0_40 = arith.constant 0 : index
    %121 = vector.load %arg11[%120, %c0_40] : memref<16x64xf32, #tpu.memory_space<vmem>>, vector<2x32xf32>
    tpu.vector_store %arg11[%120, %c0_40], %118 {strides = array<i32>} : memref<16x64xf32, #tpu.memory_space<vmem>>, vector<2x32xf32>,
    %122 = vector.extract_strided_slice %117 {offsets = [2, 0], sizes = [2, 32], strides = [1, 1]} : vector<4x32xf32> to vector<2x32xf32>
    %c2_i32_41 = arith.constant 2 : i32
    %123 = arith.muli %92, %c2_i32_41 : i32
    %124 = arith.index_cast %123 : i32 to index
    %c32_42 = arith.constant 32 : index
    %125 = vector.load %arg11[%124, %c32_42] : memref<16x64xf32, #tpu.memory_space<vmem>>, vector<2x32xf32>
    tpu.vector_store %arg11[%124, %c32_42], %122 {strides = array<i32>} : memref<16x64xf32, #tpu.memory_space<vmem>>, vector<2x32xf32>,
    %126 = tpu.concatenate %117, %117 in 1 : vector<4x32xf32>, vector<4x32xf32> -> vector<4x64xf32>
    %127 = arith.mulf %126, %9 : vector<4x64xf32>
    %c3_i32 = arith.constant 3 : i32
    %c7_i32_43 = arith.constant 7 : i32
    %128 = arith.subi %c7_i32_43, %c3_i32 : i32
    %c2_i32_44 = arith.constant 2 : i32
    %129 = arith.muli %c3_i32, %c2_i32_44 : i32
    %130 = arith.index_cast %129 : i32 to index
    %c0_45 = arith.constant 0 : index
    %131 = vector.load %arg10[%130, %c0_45] : memref<16x256xf32, #tpu.memory_space<vmem>>, vector<2x128xf32>
    %c2_i32_46 = arith.constant 2 : i32
    %132 = arith.muli %128, %c2_i32_46 : i32
    %133 = arith.index_cast %132 : i32 to index
    %c128_47 = arith.constant 128 : index
    %134 = vector.load %arg10[%133, %c128_47] : memref<16x256xf32, #tpu.memory_space<vmem>>, vector<2x128xf32>
    %135 = tpu.concatenate %131, %134 in 0 : vector<2x128xf32>, vector<2x128xf32> -> vector<4x128xf32>
    %cst_48 = arith.constant dense<0.000000e+00> : vector<4x128xf32>
    %136 = tpu.matmul %127, %17, %cst_48 {dimension_numbers = #tpu.dot_dimension_numbers<[1], [0], [0], [1], [0, 0, 1, 1], [], []>} : vector<4x64xf32>, vector<64x128xf32>, vector<4x128xf32> -> vector<4x128xf32>
    %137 = arith.addf %135, %136 : vector<4x128xf32>
    %138 = vector.extract_strided_slice %137 {offsets = [0, 0], sizes = [4, 96], strides = [1, 1]} : vector<4x128xf32> to vector<4x96xf32>
    %139 = arith.negf %138 : vector<4x96xf32>
    %140 = math.exp %139 : vector<4x96xf32>
    %cst_49 = arith.constant 1.000000e+00 : f32
    %141 = vector.broadcast %cst_49 : f32 to vector<4x96xf32>
    %142 = arith.addf %141, %140 : vector<4x96xf32>
    %143 = arith.divf %141, %142 : vector<4x96xf32>
    %144 = vector.extract_strided_slice %137 {offsets = [0, 96], sizes = [4, 32], strides = [1, 1]} : vector<4x128xf32> to vector<4x32xf32>
    %145 = math.tanh %144 : vector<4x32xf32>
    %146 = vector.extract_strided_slice %143 {offsets = [0, 32], sizes = [4, 32], strides = [1, 1]} : vector<4x96xf32> to vector<4x32xf32>
    %147 = arith.mulf %146, %114 : vector<4x32xf32>
    %148 = vector.extract_strided_slice %143 {offsets = [0, 0], sizes = [4, 32], strides = [1, 1]} : vector<4x96xf32> to vector<4x32xf32>
    %149 = arith.mulf %148, %145 : vector<4x32xf32>
    %150 = arith.addf %147, %149 : vector<4x32xf32>
    %151 = vector.extract_strided_slice %143 {offsets = [0, 64], sizes = [4, 32], strides = [1, 1]} : vector<4x96xf32> to vector<4x32xf32>
    %152 = math.tanh %150 : vector<4x32xf32>
    %153 = arith.mulf %151, %152 : vector<4x32xf32>
    %154 = vector.extract_strided_slice %153 {offsets = [0, 0], sizes = [2, 32], strides = [1, 1]} : vector<4x32xf32> to vector<2x32xf32>
    %c2_i32_50 = arith.constant 2 : i32
    %155 = arith.muli %c3_i32, %c2_i32_50 : i32
    %156 = arith.index_cast %155 : i32 to index
    %c0_51 = arith.constant 0 : index
    %157 = vector.load %arg11[%156, %c0_51] : memref<16x64xf32, #tpu.memory_space<vmem>>, vector<2x32xf32>
    tpu.vector_store %arg11[%156, %c0_51], %154 {strides = array<i32>} : memref<16x64xf32, #tpu.memory_space<vmem>>, vector<2x32xf32>,
    %158 = vector.extract_strided_slice %153 {offsets = [2, 0], sizes = [2, 32], strides = [1, 1]} : vector<4x32xf32> to vector<2x32xf32>
    %c2_i32_52 = arith.constant 2 : i32
    %159 = arith.muli %128, %c2_i32_52 : i32
    %160 = arith.index_cast %159 : i32 to index
    %c32_53 = arith.constant 32 : index
    %161 = vector.load %arg11[%160, %c32_53] : memref<16x64xf32, #tpu.memory_space<vmem>>, vector<2x32xf32>
    tpu.vector_store %arg11[%160, %c32_53], %158 {strides = array<i32>} : memref<16x64xf32, #tpu.memory_space<vmem>>, vector<2x32xf32>,
    %162 = tpu.concatenate %153, %153 in 1 : vector<4x32xf32>, vector<4x32xf32> -> vector<4x64xf32>
    %163 = arith.mulf %162, %9 : vector<4x64xf32>
    %c4_i32 = arith.constant 4 : i32
    %c7_i32_54 = arith.constant 7 : i32
    %164 = arith.subi %c7_i32_54, %c4_i32 : i32
    %c2_i32_55 = arith.constant 2 : i32
    %165 = arith.muli %c4_i32, %c2_i32_55 : i32
    %166 = arith.index_cast %165 : i32 to index
    %c0_56 = arith.constant 0 : index
    %167 = vector.load %arg10[%166, %c0_56] : memref<16x256xf32, #tpu.memory_space<vmem>>, vector<2x128xf32>
    %c2_i32_57 = arith.constant 2 : i32
    %168 = arith.muli %164, %c2_i32_57 : i32
    %169 = arith.index_cast %168 : i32 to index
    %c128_58 = arith.constant 128 : index
    %170 = vector.load %arg10[%169, %c128_58] : memref<16x256xf32, #tpu.memory_space<vmem>>, vector<2x128xf32>
    %171 = tpu.concatenate %167, %170 in 0 : vector<2x128xf32>, vector<2x128xf32> -> vector<4x128xf32>
    %cst_59 = arith.constant dense<0.000000e+00> : vector<4x128xf32>
    %172 = tpu.matmul %163, %17, %cst_59 {dimension_numbers = #tpu.dot_dimension_numbers<[1], [0], [0], [1], [0, 0, 1, 1], [], []>} : vector<4x64xf32>, vector<64x128xf32>, vector<4x128xf32> -> vector<4x128xf32>
    %173 = arith.addf %171, %172 : vector<4x128xf32>
    %174 = vector.extract_strided_slice %173 {offsets = [0, 0], sizes = [4, 96], strides = [1, 1]} : vector<4x128xf32> to vector<4x96xf32>
    %175 = arith.negf %174 : vector<4x96xf32>
    %176 = math.exp %175 : vector<4x96xf32>
    %cst_60 = arith.constant 1.000000e+00 : f32
    %177 = vector.broadcast %cst_60 : f32 to vector<4x96xf32>
    %178 = arith.addf %177, %176 : vector<4x96xf32>
    %179 = arith.divf %177, %178 : vector<4x96xf32>
    %180 = vector.extract_strided_slice %173 {offsets = [0, 96], sizes = [4, 32], strides = [1, 1]} : vector<4x128xf32> to vector<4x32xf32>
    %181 = math.tanh %180 : vector<4x32xf32>
    %182 = vector.extract_strided_slice %179 {offsets = [0, 32], sizes = [4, 32], strides = [1, 1]} : vector<4x96xf32> to vector<4x32xf32>
    %183 = arith.mulf %182, %150 : vector<4x32xf32>
    %184 = vector.extract_strided_slice %179 {offsets = [0, 0], sizes = [4, 32], strides = [1, 1]} : vector<4x96xf32> to vector<4x32xf32>
    %185 = arith.mulf %184, %181 : vector<4x32xf32>
    %186 = arith.addf %183, %185 : vector<4x32xf32>
    %187 = vector.extract_strided_slice %179 {offsets = [0, 64], sizes = [4, 32], strides = [1, 1]} : vector<4x96xf32> to vector<4x32xf32>
    %188 = math.tanh %186 : vector<4x32xf32>
    %189 = arith.mulf %187, %188 : vector<4x32xf32>
    %190 = vector.extract_strided_slice %189 {offsets = [0, 0], sizes = [2, 32], strides = [1, 1]} : vector<4x32xf32> to vector<2x32xf32>
    %c2_i32_61 = arith.constant 2 : i32
    %191 = arith.muli %c4_i32, %c2_i32_61 : i32
    %192 = arith.index_cast %191 : i32 to index
    %c0_62 = arith.constant 0 : index
    %193 = vector.load %arg11[%192, %c0_62] : memref<16x64xf32, #tpu.memory_space<vmem>>, vector<2x32xf32>
    tpu.vector_store %arg11[%192, %c0_62], %190 {strides = array<i32>} : memref<16x64xf32, #tpu.memory_space<vmem>>, vector<2x32xf32>,
    %194 = vector.extract_strided_slice %189 {offsets = [2, 0], sizes = [2, 32], strides = [1, 1]} : vector<4x32xf32> to vector<2x32xf32>
    %c2_i32_63 = arith.constant 2 : i32
    %195 = arith.muli %164, %c2_i32_63 : i32
    %196 = arith.index_cast %195 : i32 to index
    %c32_64 = arith.constant 32 : index
    %197 = vector.load %arg11[%196, %c32_64] : memref<16x64xf32, #tpu.memory_space<vmem>>, vector<2x32xf32>
    tpu.vector_store %arg11[%196, %c32_64], %194 {strides = array<i32>} : memref<16x64xf32, #tpu.memory_space<vmem>>, vector<2x32xf32>,
    %198 = tpu.concatenate %189, %189 in 1 : vector<4x32xf32>, vector<4x32xf32> -> vector<4x64xf32>
    %199 = arith.mulf %198, %9 : vector<4x64xf32>
    %c5_i32 = arith.constant 5 : i32
    %c7_i32_65 = arith.constant 7 : i32
    %200 = arith.subi %c7_i32_65, %c5_i32 : i32
    %c2_i32_66 = arith.constant 2 : i32
    %201 = arith.muli %c5_i32, %c2_i32_66 : i32
    %202 = arith.index_cast %201 : i32 to index
    %c0_67 = arith.constant 0 : index
    %203 = vector.load %arg10[%202, %c0_67] : memref<16x256xf32, #tpu.memory_space<vmem>>, vector<2x128xf32>
    %c2_i32_68 = arith.constant 2 : i32
    %204 = arith.muli %200, %c2_i32_68 : i32
    %205 = arith.index_cast %204 : i32 to index
    %c128_69 = arith.constant 128 : index
    %206 = vector.load %arg10[%205, %c128_69] : memref<16x256xf32, #tpu.memory_space<vmem>>, vector<2x128xf32>
    %207 = tpu.concatenate %203, %206 in 0 : vector<2x128xf32>, vector<2x128xf32> -> vector<4x128xf32>
    %cst_70 = arith.constant dense<0.000000e+00> : vector<4x128xf32>
    %208 = tpu.matmul %199, %17, %cst_70 {dimension_numbers = #tpu.dot_dimension_numbers<[1], [0], [0], [1], [0, 0, 1, 1], [], []>} : vector<4x64xf32>, vector<64x128xf32>, vector<4x128xf32> -> vector<4x128xf32>
    %209 = arith.addf %207, %208 : vector<4x128xf32>
    %210 = vector.extract_strided_slice %209 {offsets = [0, 0], sizes = [4, 96], strides = [1, 1]} : vector<4x128xf32> to vector<4x96xf32>
    %211 = arith.negf %210 : vector<4x96xf32>
    %212 = math.exp %211 : vector<4x96xf32>
    %cst_71 = arith.constant 1.000000e+00 : f32
    %213 = vector.broadcast %cst_71 : f32 to vector<4x96xf32>
    %214 = arith.addf %213, %212 : vector<4x96xf32>
    %215 = arith.divf %213, %214 : vector<4x96xf32>
    %216 = vector.extract_strided_slice %209 {offsets = [0, 96], sizes = [4, 32], strides = [1, 1]} : vector<4x128xf32> to vector<4x32xf32>
    %217 = math.tanh %216 : vector<4x32xf32>
    %218 = vector.extract_strided_slice %215 {offsets = [0, 32], sizes = [4, 32], strides = [1, 1]} : vector<4x96xf32> to vector<4x32xf32>
    %219 = arith.mulf %218, %186 : vector<4x32xf32>
    %220 = vector.extract_strided_slice %215 {offsets = [0, 0], sizes = [4, 32], strides = [1, 1]} : vector<4x96xf32> to vector<4x32xf32>
    %221 = arith.mulf %220, %217 : vector<4x32xf32>
    %222 = arith.addf %219, %221 : vector<4x32xf32>
    %223 = vector.extract_strided_slice %215 {offsets = [0, 64], sizes = [4, 32], strides = [1, 1]} : vector<4x96xf32> to vector<4x32xf32>
    %224 = math.tanh %222 : vector<4x32xf32>
    %225 = arith.mulf %223, %224 : vector<4x32xf32>
    %226 = vector.extract_strided_slice %225 {offsets = [0, 0], sizes = [2, 32], strides = [1, 1]} : vector<4x32xf32> to vector<2x32xf32>
    %c2_i32_72 = arith.constant 2 : i32
    %227 = arith.muli %c5_i32, %c2_i32_72 : i32
    %228 = arith.index_cast %227 : i32 to index
    %c0_73 = arith.constant 0 : index
    %229 = vector.load %arg11[%228, %c0_73] : memref<16x64xf32, #tpu.memory_space<vmem>>, vector<2x32xf32>
    tpu.vector_store %arg11[%228, %c0_73], %226 {strides = array<i32>} : memref<16x64xf32, #tpu.memory_space<vmem>>, vector<2x32xf32>,
    %230 = vector.extract_strided_slice %225 {offsets = [2, 0], sizes = [2, 32], strides = [1, 1]} : vector<4x32xf32> to vector<2x32xf32>
    %c2_i32_74 = arith.constant 2 : i32
    %231 = arith.muli %200, %c2_i32_74 : i32
    %232 = arith.index_cast %231 : i32 to index
    %c32_75 = arith.constant 32 : index
    %233 = vector.load %arg11[%232, %c32_75] : memref<16x64xf32, #tpu.memory_space<vmem>>, vector<2x32xf32>
    tpu.vector_store %arg11[%232, %c32_75], %230 {strides = array<i32>} : memref<16x64xf32, #tpu.memory_space<vmem>>, vector<2x32xf32>,
    %234 = tpu.concatenate %225, %225 in 1 : vector<4x32xf32>, vector<4x32xf32> -> vector<4x64xf32>
    %235 = arith.mulf %234, %9 : vector<4x64xf32>
    %c6_i32 = arith.constant 6 : i32
    %c7_i32_76 = arith.constant 7 : i32
    %236 = arith.subi %c7_i32_76, %c6_i32 : i32
    %c2_i32_77 = arith.constant 2 : i32
    %237 = arith.muli %c6_i32, %c2_i32_77 : i32
    %238 = arith.index_cast %237 : i32 to index
    %c0_78 = arith.constant 0 : index
    %239 = vector.load %arg10[%238, %c0_78] : memref<16x256xf32, #tpu.memory_space<vmem>>, vector<2x128xf32>
    %c2_i32_79 = arith.constant 2 : i32
    %240 = arith.muli %236, %c2_i32_79 : i32
    %241 = arith.index_cast %240 : i32 to index
    %c128_80 = arith.constant 128 : index
    %242 = vector.load %arg10[%241, %c128_80] : memref<16x256xf32, #tpu.memory_space<vmem>>, vector<2x128xf32>
    %243 = tpu.concatenate %239, %242 in 0 : vector<2x128xf32>, vector<2x128xf32> -> vector<4x128xf32>
    %cst_81 = arith.constant dense<0.000000e+00> : vector<4x128xf32>
    %244 = tpu.matmul %235, %17, %cst_81 {dimension_numbers = #tpu.dot_dimension_numbers<[1], [0], [0], [1], [0, 0, 1, 1], [], []>} : vector<4x64xf32>, vector<64x128xf32>, vector<4x128xf32> -> vector<4x128xf32>
    %245 = arith.addf %243, %244 : vector<4x128xf32>
    %246 = vector.extract_strided_slice %245 {offsets = [0, 0], sizes = [4, 96], strides = [1, 1]} : vector<4x128xf32> to vector<4x96xf32>
    %247 = arith.negf %246 : vector<4x96xf32>
    %248 = math.exp %247 : vector<4x96xf32>
    %cst_82 = arith.constant 1.000000e+00 : f32
    %249 = vector.broadcast %cst_82 : f32 to vector<4x96xf32>
    %250 = arith.addf %249, %248 : vector<4x96xf32>
    %251 = arith.divf %249, %250 : vector<4x96xf32>
    %252 = vector.extract_strided_slice %245 {offsets = [0, 96], sizes = [4, 32], strides = [1, 1]} : vector<4x128xf32> to vector<4x32xf32>
    %253 = math.tanh %252 : vector<4x32xf32>
    %254 = vector.extract_strided_slice %251 {offsets = [0, 32], sizes = [4, 32], strides = [1, 1]} : vector<4x96xf32> to vector<4x32xf32>
    %255 = arith.mulf %254, %222 : vector<4x32xf32>
    %256 = vector.extract_strided_slice %251 {offsets = [0, 0], sizes = [4, 32], strides = [1, 1]} : vector<4x96xf32> to vector<4x32xf32>
    %257 = arith.mulf %256, %253 : vector<4x32xf32>
    %258 = arith.addf %255, %257 : vector<4x32xf32>
    %259 = vector.extract_strided_slice %251 {offsets = [0, 64], sizes = [4, 32], strides = [1, 1]} : vector<4x96xf32> to vector<4x32xf32>
    %260 = math.tanh %258 : vector<4x32xf32>
    %261 = arith.mulf %259, %260 : vector<4x32xf32>
    %262 = vector.extract_strided_slice %261 {offsets = [0, 0], sizes = [2, 32], strides = [1, 1]} : vector<4x32xf32> to vector<2x32xf32>
    %c2_i32_83 = arith.constant 2 : i32
    %263 = arith.muli %c6_i32, %c2_i32_83 : i32
    %264 = arith.index_cast %263 : i32 to index
    %c0_84 = arith.constant 0 : index
    %265 = vector.load %arg11[%264, %c0_84] : memref<16x64xf32, #tpu.memory_space<vmem>>, vector<2x32xf32>
    tpu.vector_store %arg11[%264, %c0_84], %262 {strides = array<i32>} : memref<16x64xf32, #tpu.memory_space<vmem>>, vector<2x32xf32>,
    %266 = vector.extract_strided_slice %261 {offsets = [2, 0], sizes = [2, 32], strides = [1, 1]} : vector<4x32xf32> to vector<2x32xf32>
    %c2_i32_85 = arith.constant 2 : i32
    %267 = arith.muli %236, %c2_i32_85 : i32
    %268 = arith.index_cast %267 : i32 to index
    %c32_86 = arith.constant 32 : index
    %269 = vector.load %arg11[%268, %c32_86] : memref<16x64xf32, #tpu.memory_space<vmem>>, vector<2x32xf32>
    tpu.vector_store %arg11[%268, %c32_86], %266 {strides = array<i32>} : memref<16x64xf32, #tpu.memory_space<vmem>>, vector<2x32xf32>,
    %270 = tpu.concatenate %261, %261 in 1 : vector<4x32xf32>, vector<4x32xf32> -> vector<4x64xf32>
    %271 = arith.mulf %270, %9 : vector<4x64xf32>
    %c7_i32_87 = arith.constant 7 : i32
    %c7_i32_88 = arith.constant 7 : i32
    %272 = arith.subi %c7_i32_88, %c7_i32_87 : i32
    %c2_i32_89 = arith.constant 2 : i32
    %273 = arith.muli %c7_i32_87, %c2_i32_89 : i32
    %274 = arith.index_cast %273 : i32 to index
    %c0_90 = arith.constant 0 : index
    %275 = vector.load %arg10[%274, %c0_90] : memref<16x256xf32, #tpu.memory_space<vmem>>, vector<2x128xf32>
    %c2_i32_91 = arith.constant 2 : i32
    %276 = arith.muli %272, %c2_i32_91 : i32
    %277 = arith.index_cast %276 : i32 to index
    %c128_92 = arith.constant 128 : index
    %278 = vector.load %arg10[%277, %c128_92] : memref<16x256xf32, #tpu.memory_space<vmem>>, vector<2x128xf32>
    %279 = tpu.concatenate %275, %278 in 0 : vector<2x128xf32>, vector<2x128xf32> -> vector<4x128xf32>
    %cst_93 = arith.constant dense<0.000000e+00> : vector<4x128xf32>
    %280 = tpu.matmul %271, %17, %cst_93 {dimension_numbers = #tpu.dot_dimension_numbers<[1], [0], [0], [1], [0, 0, 1, 1], [], []>} : vector<4x64xf32>, vector<64x128xf32>, vector<4x128xf32> -> vector<4x128xf32>
    %281 = arith.addf %279, %280 : vector<4x128xf32>
    %282 = vector.extract_strided_slice %281 {offsets = [0, 0], sizes = [4, 96], strides = [1, 1]} : vector<4x128xf32> to vector<4x96xf32>
    %283 = arith.negf %282 : vector<4x96xf32>
    %284 = math.exp %283 : vector<4x96xf32>
    %cst_94 = arith.constant 1.000000e+00 : f32
    %285 = vector.broadcast %cst_94 : f32 to vector<4x96xf32>
    %286 = arith.addf %285, %284 : vector<4x96xf32>
    %287 = arith.divf %285, %286 : vector<4x96xf32>
    %288 = vector.extract_strided_slice %281 {offsets = [0, 96], sizes = [4, 32], strides = [1, 1]} : vector<4x128xf32> to vector<4x32xf32>
    %289 = math.tanh %288 : vector<4x32xf32>
    %290 = vector.extract_strided_slice %287 {offsets = [0, 32], sizes = [4, 32], strides = [1, 1]} : vector<4x96xf32> to vector<4x32xf32>
    %291 = arith.mulf %290, %258 : vector<4x32xf32>
    %292 = vector.extract_strided_slice %287 {offsets = [0, 0], sizes = [4, 32], strides = [1, 1]} : vector<4x96xf32> to vector<4x32xf32>
    %293 = arith.mulf %292, %289 : vector<4x32xf32>
    %294 = arith.addf %291, %293 : vector<4x32xf32>
    %295 = vector.extract_strided_slice %287 {offsets = [0, 64], sizes = [4, 32], strides = [1, 1]} : vector<4x96xf32> to vector<4x32xf32>
    %296 = math.tanh %294 : vector<4x32xf32>
    %297 = arith.mulf %295, %296 : vector<4x32xf32>
    %298 = vector.extract_strided_slice %297 {offsets = [0, 0], sizes = [2, 32], strides = [1, 1]} : vector<4x32xf32> to vector<2x32xf32>
    %c2_i32_95 = arith.constant 2 : i32
    %299 = arith.muli %c7_i32_87, %c2_i32_95 : i32
    %300 = arith.index_cast %299 : i32 to index
    %c0_96 = arith.constant 0 : index
    %301 = vector.load %arg11[%300, %c0_96] : memref<16x64xf32, #tpu.memory_space<vmem>>, vector<2x32xf32>
    tpu.vector_store %arg11[%300, %c0_96], %298 {strides = array<i32>} : memref<16x64xf32, #tpu.memory_space<vmem>>, vector<2x32xf32>,
    %302 = vector.extract_strided_slice %297 {offsets = [2, 0], sizes = [2, 32], strides = [1, 1]} : vector<4x32xf32> to vector<2x32xf32>
    %c2_i32_97 = arith.constant 2 : i32
    %303 = arith.muli %272, %c2_i32_97 : i32
    %304 = arith.index_cast %303 : i32 to index
    %c32_98 = arith.constant 32 : index
    %305 = vector.load %arg11[%304, %c32_98] : memref<16x64xf32, #tpu.memory_space<vmem>>, vector<2x32xf32>
    tpu.vector_store %arg11[%304, %c32_98], %302 {strides = array<i32>} : memref<16x64xf32, #tpu.memory_space<vmem>>, vector<2x32xf32>,
    %306 = tpu.concatenate %297, %297 in 1 : vector<4x32xf32>, vector<4x32xf32> -> vector<4x64xf32>
    %307 = arith.mulf %306, %9 : vector<4x64xf32>
    %c8_i32 = arith.constant 8 : i32
    %c0_99 = arith.constant 0 : index
    %c0_100 = arith.constant 0 : index
    %308 = vector.load %arg11[%c0_99, %c0_100] : memref<16x64xf32, #tpu.memory_space<vmem>>, vector<16x64xf32>
    %c0_101 = arith.constant 0 : index
    %c0_102 = arith.constant 0 : index
    %309 = vector.load %arg4[%c0_101, %c0_102] : memref<64x256xf32, #tpu.memory_space<vmem>>, vector<64x256xf32>
    %cst_103 = arith.constant dense<0.000000e+00> : vector<16x256xf32>
    %310 = tpu.matmul %308, %309, %cst_103 {dimension_numbers = #tpu.dot_dimension_numbers<[1], [0], [0], [1], [0, 0, 1, 1], [], []>} : vector<16x64xf32>, vector<64x256xf32>, vector<16x256xf32> -> vector<16x256xf32>
    %c0_104 = arith.constant 0 : index
    %c0_105 = arith.constant 0 : index
    %311 = vector.load %arg5[%c0_104, %c0_105] : memref<1x256xf32, #tpu.memory_space<vmem>>, vector<1x256xf32>
    %312 = vector.broadcast %311 : vector<1x256xf32> to vector<16x256xf32>
    %313 = arith.addf %310, %312 : vector<16x256xf32>
    %c0_106 = arith.constant 0 : index
    %c0_107 = arith.constant 0 : index
    %314 = vector.load %arg10[%c0_106, %c0_107] : memref<16x256xf32, #tpu.memory_space<vmem>>, vector<16x256xf32>
    tpu.vector_store %arg10[%c0_106, %c0_107], %313 {strides = array<i32>} : memref<16x256xf32, #tpu.memory_space<vmem>>, vector<16x256xf32>,
    %c0_108 = arith.constant 0 : index
    %c0_109 = arith.constant 0 : index
    %315 = vector.load %arg6[%c0_108, %c0_109] : memref<64x128xf32, #tpu.memory_space<vmem>>, vector<64x128xf32>
    %cst_110 = arith.constant 0.000000e+00 : f32
    %316 = vector.broadcast %cst_110 : f32 to vector<4x64xf32>
    %cst_111 = arith.constant 0.000000e+00 : f32
    %317 = vector.broadcast %cst_111 : f32 to vector<4x32xf32>
    %c0_i32_112 = arith.constant 0 : i32
    %c7_i32_113 = arith.constant 7 : i32
    %318 = arith.subi %c7_i32_113, %c0_i32_112 : i32
    %c2_i32_114 = arith.constant 2 : i32
    %319 = arith.muli %c0_i32_112, %c2_i32_114 : i32
    %320 = arith.index_cast %319 : i32 to index
    %c0_115 = arith.constant 0 : index
    %321 = vector.load %arg10[%320, %c0_115] : memref<16x256xf32, #tpu.memory_space<vmem>>, vector<2x128xf32>
    %c2_i32_116 = arith.constant 2 : i32
    %322 = arith.muli %318, %c2_i32_116 : i32
    %323 = arith.index_cast %322 : i32 to index
    %c128_117 = arith.constant 128 : index
    %324 = vector.load %arg10[%323, %c128_117] : memref<16x256xf32, #tpu.memory_space<vmem>>, vector<2x128xf32>
    %325 = tpu.concatenate %321, %324 in 0 : vector<2x128xf32>, vector<2x128xf32> -> vector<4x128xf32>
    %cst_118 = arith.constant dense<0.000000e+00> : vector<4x128xf32>
    %326 = tpu.matmul %316, %315, %cst_118 {dimension_numbers = #tpu.dot_dimension_numbers<[1], [0], [0], [1], [0, 0, 1, 1], [], []>} : vector<4x64xf32>, vector<64x128xf32>, vector<4x128xf32> -> vector<4x128xf32>
    %327 = arith.addf %325, %326 : vector<4x128xf32>
    %328 = vector.extract_strided_slice %327 {offsets = [0, 0], sizes = [4, 96], strides = [1, 1]} : vector<4x128xf32> to vector<4x96xf32>
    %329 = arith.negf %328 : vector<4x96xf32>
    %330 = math.exp %329 : vector<4x96xf32>
    %cst_119 = arith.constant 1.000000e+00 : f32
    %331 = vector.broadcast %cst_119 : f32 to vector<4x96xf32>
    %332 = arith.addf %331, %330 : vector<4x96xf32>
    %333 = arith.divf %331, %332 : vector<4x96xf32>
    %334 = vector.extract_strided_slice %327 {offsets = [0, 96], sizes = [4, 32], strides = [1, 1]} : vector<4x128xf32> to vector<4x32xf32>
    %335 = math.tanh %334 : vector<4x32xf32>
    %336 = vector.extract_strided_slice %333 {offsets = [0, 32], sizes = [4, 32], strides = [1, 1]} : vector<4x96xf32> to vector<4x32xf32>
    %337 = arith.mulf %336, %317 : vector<4x32xf32>
    %338 = vector.extract_strided_slice %333 {offsets = [0, 0], sizes = [4, 32], strides = [1, 1]} : vector<4x96xf32> to vector<4x32xf32>
    %339 = arith.mulf %338, %335 : vector<4x32xf32>
    %340 = arith.addf %337, %339 : vector<4x32xf32>
    %341 = vector.extract_strided_slice %333 {offsets = [0, 64], sizes = [4, 32], strides = [1, 1]} : vector<4x96xf32> to vector<4x32xf32>
    %342 = math.tanh %340 : vector<4x32xf32>
    %343 = arith.mulf %341, %342 : vector<4x32xf32>
    %344 = vector.extract_strided_slice %343 {offsets = [0, 0], sizes = [2, 32], strides = [1, 1]} : vector<4x32xf32> to vector<2x32xf32>
    %c2_i32_120 = arith.constant 2 : i32
    %345 = arith.muli %c0_i32_112, %c2_i32_120 : i32
    %346 = arith.index_cast %345 : i32 to index
    %c0_121 = arith.constant 0 : index
    %347 = vector.load %arg11[%346, %c0_121] : memref<16x64xf32, #tpu.memory_space<vmem>>, vector<2x32xf32>
    tpu.vector_store %arg11[%346, %c0_121], %344 {strides = array<i32>} : memref<16x64xf32, #tpu.memory_space<vmem>>, vector<2x32xf32>,
    %348 = vector.extract_strided_slice %343 {offsets = [2, 0], sizes = [2, 32], strides = [1, 1]} : vector<4x32xf32> to vector<2x32xf32>
    %c2_i32_122 = arith.constant 2 : i32
    %349 = arith.muli %318, %c2_i32_122 : i32
    %350 = arith.index_cast %349 : i32 to index
    %c32_123 = arith.constant 32 : index
    %351 = vector.load %arg11[%350, %c32_123] : memref<16x64xf32, #tpu.memory_space<vmem>>, vector<2x32xf32>
    tpu.vector_store %arg11[%350, %c32_123], %348 {strides = array<i32>} : memref<16x64xf32, #tpu.memory_space<vmem>>, vector<2x32xf32>,
    %352 = tpu.concatenate %343, %343 in 1 : vector<4x32xf32>, vector<4x32xf32> -> vector<4x64xf32>
    %353 = arith.mulf %352, %9 : vector<4x64xf32>
    %c1_i32_124 = arith.constant 1 : i32
    %c7_i32_125 = arith.constant 7 : i32
    %354 = arith.subi %c7_i32_125, %c1_i32_124 : i32
    %c2_i32_126 = arith.constant 2 : i32
    %355 = arith.muli %c1_i32_124, %c2_i32_126 : i32
    %356 = arith.index_cast %355 : i32 to index
    %c0_127 = arith.constant 0 : index
    %357 = vector.load %arg10[%356, %c0_127] : memref<16x256xf32, #tpu.memory_space<vmem>>, vector<2x128xf32>
    %c2_i32_128 = arith.constant 2 : i32
    %358 = arith.muli %354, %c2_i32_128 : i32
    %359 = arith.index_cast %358 : i32 to index
    %c128_129 = arith.constant 128 : index
    %360 = vector.load %arg10[%359, %c128_129] : memref<16x256xf32, #tpu.memory_space<vmem>>, vector<2x128xf32>
    %361 = tpu.concatenate %357, %360 in 0 : vector<2x128xf32>, vector<2x128xf32> -> vector<4x128xf32>
    %cst_130 = arith.constant dense<0.000000e+00> : vector<4x128xf32>
    %362 = tpu.matmul %353, %315, %cst_130 {dimension_numbers = #tpu.dot_dimension_numbers<[1], [0], [0], [1], [0, 0, 1, 1], [], []>} : vector<4x64xf32>, vector<64x128xf32>, vector<4x128xf32> -> vector<4x128xf32>
    %363 = arith.addf %361, %362 : vector<4x128xf32>
    %364 = vector.extract_strided_slice %363 {offsets = [0, 0], sizes = [4, 96], strides = [1, 1]} : vector<4x128xf32> to vector<4x96xf32>
    %365 = arith.negf %364 : vector<4x96xf32>
    %366 = math.exp %365 : vector<4x96xf32>
    %cst_131 = arith.constant 1.000000e+00 : f32
    %367 = vector.broadcast %cst_131 : f32 to vector<4x96xf32>
    %368 = arith.addf %367, %366 : vector<4x96xf32>
    %369 = arith.divf %367, %368 : vector<4x96xf32>
    %370 = vector.extract_strided_slice %363 {offsets = [0, 96], sizes = [4, 32], strides = [1, 1]} : vector<4x128xf32> to vector<4x32xf32>
    %371 = math.tanh %370 : vector<4x32xf32>
    %372 = vector.extract_strided_slice %369 {offsets = [0, 32], sizes = [4, 32], strides = [1, 1]} : vector<4x96xf32> to vector<4x32xf32>
    %373 = arith.mulf %372, %340 : vector<4x32xf32>
    %374 = vector.extract_strided_slice %369 {offsets = [0, 0], sizes = [4, 32], strides = [1, 1]} : vector<4x96xf32> to vector<4x32xf32>
    %375 = arith.mulf %374, %371 : vector<4x32xf32>
    %376 = arith.addf %373, %375 : vector<4x32xf32>
    %377 = vector.extract_strided_slice %369 {offsets = [0, 64], sizes = [4, 32], strides = [1, 1]} : vector<4x96xf32> to vector<4x32xf32>
    %378 = math.tanh %376 : vector<4x32xf32>
    %379 = arith.mulf %377, %378 : vector<4x32xf32>
    %380 = vector.extract_strided_slice %379 {offsets = [0, 0], sizes = [2, 32], strides = [1, 1]} : vector<4x32xf32> to vector<2x32xf32>
    %c2_i32_132 = arith.constant 2 : i32
    %381 = arith.muli %c1_i32_124, %c2_i32_132 : i32
    %382 = arith.index_cast %381 : i32 to index
    %c0_133 = arith.constant 0 : index
    %383 = vector.load %arg11[%382, %c0_133] : memref<16x64xf32, #tpu.memory_space<vmem>>, vector<2x32xf32>
    tpu.vector_store %arg11[%382, %c0_133], %380 {strides = array<i32>} : memref<16x64xf32, #tpu.memory_space<vmem>>, vector<2x32xf32>,
    %384 = vector.extract_strided_slice %379 {offsets = [2, 0], sizes = [2, 32], strides = [1, 1]} : vector<4x32xf32> to vector<2x32xf32>
    %c2_i32_134 = arith.constant 2 : i32
    %385 = arith.muli %354, %c2_i32_134 : i32
    %386 = arith.index_cast %385 : i32 to index
    %c32_135 = arith.constant 32 : index
    %387 = vector.load %arg11[%386, %c32_135] : memref<16x64xf32, #tpu.memory_space<vmem>>, vector<2x32xf32>
    tpu.vector_store %arg11[%386, %c32_135], %384 {strides = array<i32>} : memref<16x64xf32, #tpu.memory_space<vmem>>, vector<2x32xf32>,
    %388 = tpu.concatenate %379, %379 in 1 : vector<4x32xf32>, vector<4x32xf32> -> vector<4x64xf32>
    %389 = arith.mulf %388, %9 : vector<4x64xf32>
    %c2_i32_136 = arith.constant 2 : i32
    %c7_i32_137 = arith.constant 7 : i32
    %390 = arith.subi %c7_i32_137, %c2_i32_136 : i32
    %c2_i32_138 = arith.constant 2 : i32
    %391 = arith.muli %c2_i32_136, %c2_i32_138 : i32
    %392 = arith.index_cast %391 : i32 to index
    %c0_139 = arith.constant 0 : index
    %393 = vector.load %arg10[%392, %c0_139] : memref<16x256xf32, #tpu.memory_space<vmem>>, vector<2x128xf32>
    %c2_i32_140 = arith.constant 2 : i32
    %394 = arith.muli %390, %c2_i32_140 : i32
    %395 = arith.index_cast %394 : i32 to index
    %c128_141 = arith.constant 128 : index
    %396 = vector.load %arg10[%395, %c128_141] : memref<16x256xf32, #tpu.memory_space<vmem>>, vector<2x128xf32>
    %397 = tpu.concatenate %393, %396 in 0 : vector<2x128xf32>, vector<2x128xf32> -> vector<4x128xf32>
    %cst_142 = arith.constant dense<0.000000e+00> : vector<4x128xf32>
    %398 = tpu.matmul %389, %315, %cst_142 {dimension_numbers = #tpu.dot_dimension_numbers<[1], [0], [0], [1], [0, 0, 1, 1], [], []>} : vector<4x64xf32>, vector<64x128xf32>, vector<4x128xf32> -> vector<4x128xf32>
    %399 = arith.addf %397, %398 : vector<4x128xf32>
    %400 = vector.extract_strided_slice %399 {offsets = [0, 0], sizes = [4, 96], strides = [1, 1]} : vector<4x128xf32> to vector<4x96xf32>
    %401 = arith.negf %400 : vector<4x96xf32>
    %402 = math.exp %401 : vector<4x96xf32>
    %cst_143 = arith.constant 1.000000e+00 : f32
    %403 = vector.broadcast %cst_143 : f32 to vector<4x96xf32>
    %404 = arith.addf %403, %402 : vector<4x96xf32>
    %405 = arith.divf %403, %404 : vector<4x96xf32>
    %406 = vector.extract_strided_slice %399 {offsets = [0, 96], sizes = [4, 32], strides = [1, 1]} : vector<4x128xf32> to vector<4x32xf32>
    %407 = math.tanh %406 : vector<4x32xf32>
    %408 = vector.extract_strided_slice %405 {offsets = [0, 32], sizes = [4, 32], strides = [1, 1]} : vector<4x96xf32> to vector<4x32xf32>
    %409 = arith.mulf %408, %376 : vector<4x32xf32>
    %410 = vector.extract_strided_slice %405 {offsets = [0, 0], sizes = [4, 32], strides = [1, 1]} : vector<4x96xf32> to vector<4x32xf32>
    %411 = arith.mulf %410, %407 : vector<4x32xf32>
    %412 = arith.addf %409, %411 : vector<4x32xf32>
    %413 = vector.extract_strided_slice %405 {offsets = [0, 64], sizes = [4, 32], strides = [1, 1]} : vector<4x96xf32> to vector<4x32xf32>
    %414 = math.tanh %412 : vector<4x32xf32>
    %415 = arith.mulf %413, %414 : vector<4x32xf32>
    %416 = vector.extract_strided_slice %415 {offsets = [0, 0], sizes = [2, 32], strides = [1, 1]} : vector<4x32xf32> to vector<2x32xf32>
    %c2_i32_144 = arith.constant 2 : i32
    %417 = arith.muli %c2_i32_136, %c2_i32_144 : i32
    %418 = arith.index_cast %417 : i32 to index
    %c0_145 = arith.constant 0 : index
    %419 = vector.load %arg11[%418, %c0_145] : memref<16x64xf32, #tpu.memory_space<vmem>>, vector<2x32xf32>
    tpu.vector_store %arg11[%418, %c0_145], %416 {strides = array<i32>} : memref<16x64xf32, #tpu.memory_space<vmem>>, vector<2x32xf32>,
    %420 = vector.extract_strided_slice %415 {offsets = [2, 0], sizes = [2, 32], strides = [1, 1]} : vector<4x32xf32> to vector<2x32xf32>
    %c2_i32_146 = arith.constant 2 : i32
    %421 = arith.muli %390, %c2_i32_146 : i32
    %422 = arith.index_cast %421 : i32 to index
    %c32_147 = arith.constant 32 : index
    %423 = vector.load %arg11[%422, %c32_147] : memref<16x64xf32, #tpu.memory_space<vmem>>, vector<2x32xf32>
    tpu.vector_store %arg11[%422, %c32_147], %420 {strides = array<i32>} : memref<16x64xf32, #tpu.memory_space<vmem>>, vector<2x32xf32>,
    %424 = tpu.concatenate %415, %415 in 1 : vector<4x32xf32>, vector<4x32xf32> -> vector<4x64xf32>
    %425 = arith.mulf %424, %9 : vector<4x64xf32>
    %c3_i32_148 = arith.constant 3 : i32
    %c7_i32_149 = arith.constant 7 : i32
    %426 = arith.subi %c7_i32_149, %c3_i32_148 : i32
    %c2_i32_150 = arith.constant 2 : i32
    %427 = arith.muli %c3_i32_148, %c2_i32_150 : i32
    %428 = arith.index_cast %427 : i32 to index
    %c0_151 = arith.constant 0 : index
    %429 = vector.load %arg10[%428, %c0_151] : memref<16x256xf32, #tpu.memory_space<vmem>>, vector<2x128xf32>
    %c2_i32_152 = arith.constant 2 : i32
    %430 = arith.muli %426, %c2_i32_152 : i32
    %431 = arith.index_cast %430 : i32 to index
    %c128_153 = arith.constant 128 : index
    %432 = vector.load %arg10[%431, %c128_153] : memref<16x256xf32, #tpu.memory_space<vmem>>, vector<2x128xf32>
    %433 = tpu.concatenate %429, %432 in 0 : vector<2x128xf32>, vector<2x128xf32> -> vector<4x128xf32>
    %cst_154 = arith.constant dense<0.000000e+00> : vector<4x128xf32>
    %434 = tpu.matmul %425, %315, %cst_154 {dimension_numbers = #tpu.dot_dimension_numbers<[1], [0], [0], [1], [0, 0, 1, 1], [], []>} : vector<4x64xf32>, vector<64x128xf32>, vector<4x128xf32> -> vector<4x128xf32>
    %435 = arith.addf %433, %434 : vector<4x128xf32>
    %436 = vector.extract_strided_slice %435 {offsets = [0, 0], sizes = [4, 96], strides = [1, 1]} : vector<4x128xf32> to vector<4x96xf32>
    %437 = arith.negf %436 : vector<4x96xf32>
    %438 = math.exp %437 : vector<4x96xf32>
    %cst_155 = arith.constant 1.000000e+00 : f32
    %439 = vector.broadcast %cst_155 : f32 to vector<4x96xf32>
    %440 = arith.addf %439, %438 : vector<4x96xf32>
    %441 = arith.divf %439, %440 : vector<4x96xf32>
    %442 = vector.extract_strided_slice %435 {offsets = [0, 96], sizes = [4, 32], strides = [1, 1]} : vector<4x128xf32> to vector<4x32xf32>
    %443 = math.tanh %442 : vector<4x32xf32>
    %444 = vector.extract_strided_slice %441 {offsets = [0, 32], sizes = [4, 32], strides = [1, 1]} : vector<4x96xf32> to vector<4x32xf32>
    %445 = arith.mulf %444, %412 : vector<4x32xf32>
    %446 = vector.extract_strided_slice %441 {offsets = [0, 0], sizes = [4, 32], strides = [1, 1]} : vector<4x96xf32> to vector<4x32xf32>
    %447 = arith.mulf %446, %443 : vector<4x32xf32>
    %448 = arith.addf %445, %447 : vector<4x32xf32>
    %449 = vector.extract_strided_slice %441 {offsets = [0, 64], sizes = [4, 32], strides = [1, 1]} : vector<4x96xf32> to vector<4x32xf32>
    %450 = math.tanh %448 : vector<4x32xf32>
    %451 = arith.mulf %449, %450 : vector<4x32xf32>
    %452 = vector.extract_strided_slice %451 {offsets = [0, 0], sizes = [2, 32], strides = [1, 1]} : vector<4x32xf32> to vector<2x32xf32>
    %c2_i32_156 = arith.constant 2 : i32
    %453 = arith.muli %c3_i32_148, %c2_i32_156 : i32
    %454 = arith.index_cast %453 : i32 to index
    %c0_157 = arith.constant 0 : index
    %455 = vector.load %arg11[%454, %c0_157] : memref<16x64xf32, #tpu.memory_space<vmem>>, vector<2x32xf32>
    tpu.vector_store %arg11[%454, %c0_157], %452 {strides = array<i32>} : memref<16x64xf32, #tpu.memory_space<vmem>>, vector<2x32xf32>,
    %456 = vector.extract_strided_slice %451 {offsets = [2, 0], sizes = [2, 32], strides = [1, 1]} : vector<4x32xf32> to vector<2x32xf32>
    %c2_i32_158 = arith.constant 2 : i32
    %457 = arith.muli %426, %c2_i32_158 : i32
    %458 = arith.index_cast %457 : i32 to index
    %c32_159 = arith.constant 32 : index
    %459 = vector.load %arg11[%458, %c32_159] : memref<16x64xf32, #tpu.memory_space<vmem>>, vector<2x32xf32>
    tpu.vector_store %arg11[%458, %c32_159], %456 {strides = array<i32>} : memref<16x64xf32, #tpu.memory_space<vmem>>, vector<2x32xf32>,
    %460 = tpu.concatenate %451, %451 in 1 : vector<4x32xf32>, vector<4x32xf32> -> vector<4x64xf32>
    %461 = arith.mulf %460, %9 : vector<4x64xf32>
    %c4_i32_160 = arith.constant 4 : i32
    %c7_i32_161 = arith.constant 7 : i32
    %462 = arith.subi %c7_i32_161, %c4_i32_160 : i32
    %c2_i32_162 = arith.constant 2 : i32
    %463 = arith.muli %c4_i32_160, %c2_i32_162 : i32
    %464 = arith.index_cast %463 : i32 to index
    %c0_163 = arith.constant 0 : index
    %465 = vector.load %arg10[%464, %c0_163] : memref<16x256xf32, #tpu.memory_space<vmem>>, vector<2x128xf32>
    %c2_i32_164 = arith.constant 2 : i32
    %466 = arith.muli %462, %c2_i32_164 : i32
    %467 = arith.index_cast %466 : i32 to index
    %c128_165 = arith.constant 128 : index
    %468 = vector.load %arg10[%467, %c128_165] : memref<16x256xf32, #tpu.memory_space<vmem>>, vector<2x128xf32>
    %469 = tpu.concatenate %465, %468 in 0 : vector<2x128xf32>, vector<2x128xf32> -> vector<4x128xf32>
    %cst_166 = arith.constant dense<0.000000e+00> : vector<4x128xf32>
    %470 = tpu.matmul %461, %315, %cst_166 {dimension_numbers = #tpu.dot_dimension_numbers<[1], [0], [0], [1], [0, 0, 1, 1], [], []>} : vector<4x64xf32>, vector<64x128xf32>, vector<4x128xf32> -> vector<4x128xf32>
    %471 = arith.addf %469, %470 : vector<4x128xf32>
    %472 = vector.extract_strided_slice %471 {offsets = [0, 0], sizes = [4, 96], strides = [1, 1]} : vector<4x128xf32> to vector<4x96xf32>
    %473 = arith.negf %472 : vector<4x96xf32>
    %474 = math.exp %473 : vector<4x96xf32>
    %cst_167 = arith.constant 1.000000e+00 : f32
    %475 = vector.broadcast %cst_167 : f32 to vector<4x96xf32>
    %476 = arith.addf %475, %474 : vector<4x96xf32>
    %477 = arith.divf %475, %476 : vector<4x96xf32>
    %478 = vector.extract_strided_slice %471 {offsets = [0, 96], sizes = [4, 32], strides = [1, 1]} : vector<4x128xf32> to vector<4x32xf32>
    %479 = math.tanh %478 : vector<4x32xf32>
    %480 = vector.extract_strided_slice %477 {offsets = [0, 32], sizes = [4, 32], strides = [1, 1]} : vector<4x96xf32> to vector<4x32xf32>
    %481 = arith.mulf %480, %448 : vector<4x32xf32>
    %482 = vector.extract_strided_slice %477 {offsets = [0, 0], sizes = [4, 32], strides = [1, 1]} : vector<4x96xf32> to vector<4x32xf32>
    %483 = arith.mulf %482, %479 : vector<4x32xf32>
    %484 = arith.addf %481, %483 : vector<4x32xf32>
    %485 = vector.extract_strided_slice %477 {offsets = [0, 64], sizes = [4, 32], strides = [1, 1]} : vector<4x96xf32> to vector<4x32xf32>
    %486 = math.tanh %484 : vector<4x32xf32>
    %487 = arith.mulf %485, %486 : vector<4x32xf32>
    %488 = vector.extract_strided_slice %487 {offsets = [0, 0], sizes = [2, 32], strides = [1, 1]} : vector<4x32xf32> to vector<2x32xf32>
    %c2_i32_168 = arith.constant 2 : i32
    %489 = arith.muli %c4_i32_160, %c2_i32_168 : i32
    %490 = arith.index_cast %489 : i32 to index
    %c0_169 = arith.constant 0 : index
    %491 = vector.load %arg11[%490, %c0_169] : memref<16x64xf32, #tpu.memory_space<vmem>>, vector<2x32xf32>
    tpu.vector_store %arg11[%490, %c0_169], %488 {strides = array<i32>} : memref<16x64xf32, #tpu.memory_space<vmem>>, vector<2x32xf32>,
    %492 = vector.extract_strided_slice %487 {offsets = [2, 0], sizes = [2, 32], strides = [1, 1]} : vector<4x32xf32> to vector<2x32xf32>
    %c2_i32_170 = arith.constant 2 : i32
    %493 = arith.muli %462, %c2_i32_170 : i32
    %494 = arith.index_cast %493 : i32 to index
    %c32_171 = arith.constant 32 : index
    %495 = vector.load %arg11[%494, %c32_171] : memref<16x64xf32, #tpu.memory_space<vmem>>, vector<2x32xf32>
    tpu.vector_store %arg11[%494, %c32_171], %492 {strides = array<i32>} : memref<16x64xf32, #tpu.memory_space<vmem>>, vector<2x32xf32>,
    %496 = tpu.concatenate %487, %487 in 1 : vector<4x32xf32>, vector<4x32xf32> -> vector<4x64xf32>
    %497 = arith.mulf %496, %9 : vector<4x64xf32>
    %c5_i32_172 = arith.constant 5 : i32
    %c7_i32_173 = arith.constant 7 : i32
    %498 = arith.subi %c7_i32_173, %c5_i32_172 : i32
    %c2_i32_174 = arith.constant 2 : i32
    %499 = arith.muli %c5_i32_172, %c2_i32_174 : i32
    %500 = arith.index_cast %499 : i32 to index
    %c0_175 = arith.constant 0 : index
    %501 = vector.load %arg10[%500, %c0_175] : memref<16x256xf32, #tpu.memory_space<vmem>>, vector<2x128xf32>
    %c2_i32_176 = arith.constant 2 : i32
    %502 = arith.muli %498, %c2_i32_176 : i32
    %503 = arith.index_cast %502 : i32 to index
    %c128_177 = arith.constant 128 : index
    %504 = vector.load %arg10[%503, %c128_177] : memref<16x256xf32, #tpu.memory_space<vmem>>, vector<2x128xf32>
    %505 = tpu.concatenate %501, %504 in 0 : vector<2x128xf32>, vector<2x128xf32> -> vector<4x128xf32>
    %cst_178 = arith.constant dense<0.000000e+00> : vector<4x128xf32>
    %506 = tpu.matmul %497, %315, %cst_178 {dimension_numbers = #tpu.dot_dimension_numbers<[1], [0], [0], [1], [0, 0, 1, 1], [], []>} : vector<4x64xf32>, vector<64x128xf32>, vector<4x128xf32> -> vector<4x128xf32>
    %507 = arith.addf %505, %506 : vector<4x128xf32>
    %508 = vector.extract_strided_slice %507 {offsets = [0, 0], sizes = [4, 96], strides = [1, 1]} : vector<4x128xf32> to vector<4x96xf32>
    %509 = arith.negf %508 : vector<4x96xf32>
    %510 = math.exp %509 : vector<4x96xf32>
    %cst_179 = arith.constant 1.000000e+00 : f32
    %511 = vector.broadcast %cst_179 : f32 to vector<4x96xf32>
    %512 = arith.addf %511, %510 : vector<4x96xf32>
    %513 = arith.divf %511, %512 : vector<4x96xf32>
    %514 = vector.extract_strided_slice %507 {offsets = [0, 96], sizes = [4, 32], strides = [1, 1]} : vector<4x128xf32> to vector<4x32xf32>
    %515 = math.tanh %514 : vector<4x32xf32>
    %516 = vector.extract_strided_slice %513 {offsets = [0, 32], sizes = [4, 32], strides = [1, 1]} : vector<4x96xf32> to vector<4x32xf32>
    %517 = arith.mulf %516, %484 : vector<4x32xf32>
    %518 = vector.extract_strided_slice %513 {offsets = [0, 0], sizes = [4, 32], strides = [1, 1]} : vector<4x96xf32> to vector<4x32xf32>
    %519 = arith.mulf %518, %515 : vector<4x32xf32>
    %520 = arith.addf %517, %519 : vector<4x32xf32>
    %521 = vector.extract_strided_slice %513 {offsets = [0, 64], sizes = [4, 32], strides = [1, 1]} : vector<4x96xf32> to vector<4x32xf32>
    %522 = math.tanh %520 : vector<4x32xf32>
    %523 = arith.mulf %521, %522 : vector<4x32xf32>
    %524 = vector.extract_strided_slice %523 {offsets = [0, 0], sizes = [2, 32], strides = [1, 1]} : vector<4x32xf32> to vector<2x32xf32>
    %c2_i32_180 = arith.constant 2 : i32
    %525 = arith.muli %c5_i32_172, %c2_i32_180 : i32
    %526 = arith.index_cast %525 : i32 to index
    %c0_181 = arith.constant 0 : index
    %527 = vector.load %arg11[%526, %c0_181] : memref<16x64xf32, #tpu.memory_space<vmem>>, vector<2x32xf32>
    tpu.vector_store %arg11[%526, %c0_181], %524 {strides = array<i32>} : memref<16x64xf32, #tpu.memory_space<vmem>>, vector<2x32xf32>,
    %528 = vector.extract_strided_slice %523 {offsets = [2, 0], sizes = [2, 32], strides = [1, 1]} : vector<4x32xf32> to vector<2x32xf32>
    %c2_i32_182 = arith.constant 2 : i32
    %529 = arith.muli %498, %c2_i32_182 : i32
    %530 = arith.index_cast %529 : i32 to index
    %c32_183 = arith.constant 32 : index
    %531 = vector.load %arg11[%530, %c32_183] : memref<16x64xf32, #tpu.memory_space<vmem>>, vector<2x32xf32>
    tpu.vector_store %arg11[%530, %c32_183], %528 {strides = array<i32>} : memref<16x64xf32, #tpu.memory_space<vmem>>, vector<2x32xf32>,
    %532 = tpu.concatenate %523, %523 in 1 : vector<4x32xf32>, vector<4x32xf32> -> vector<4x64xf32>
    %533 = arith.mulf %532, %9 : vector<4x64xf32>
    %c6_i32_184 = arith.constant 6 : i32
    %c7_i32_185 = arith.constant 7 : i32
    %534 = arith.subi %c7_i32_185, %c6_i32_184 : i32
    %c2_i32_186 = arith.constant 2 : i32
    %535 = arith.muli %c6_i32_184, %c2_i32_186 : i32
    %536 = arith.index_cast %535 : i32 to index
    %c0_187 = arith.constant 0 : index
    %537 = vector.load %arg10[%536, %c0_187] : memref<16x256xf32, #tpu.memory_space<vmem>>, vector<2x128xf32>
    %c2_i32_188 = arith.constant 2 : i32
    %538 = arith.muli %534, %c2_i32_188 : i32
    %539 = arith.index_cast %538 : i32 to index
    %c128_189 = arith.constant 128 : index
    %540 = vector.load %arg10[%539, %c128_189] : memref<16x256xf32, #tpu.memory_space<vmem>>, vector<2x128xf32>
    %541 = tpu.concatenate %537, %540 in 0 : vector<2x128xf32>, vector<2x128xf32> -> vector<4x128xf32>
    %cst_190 = arith.constant dense<0.000000e+00> : vector<4x128xf32>
    %542 = tpu.matmul %533, %315, %cst_190 {dimension_numbers = #tpu.dot_dimension_numbers<[1], [0], [0], [1], [0, 0, 1, 1], [], []>} : vector<4x64xf32>, vector<64x128xf32>, vector<4x128xf32> -> vector<4x128xf32>
    %543 = arith.addf %541, %542 : vector<4x128xf32>
    %544 = vector.extract_strided_slice %543 {offsets = [0, 0], sizes = [4, 96], strides = [1, 1]} : vector<4x128xf32> to vector<4x96xf32>
    %545 = arith.negf %544 : vector<4x96xf32>
    %546 = math.exp %545 : vector<4x96xf32>
    %cst_191 = arith.constant 1.000000e+00 : f32
    %547 = vector.broadcast %cst_191 : f32 to vector<4x96xf32>
    %548 = arith.addf %547, %546 : vector<4x96xf32>
    %549 = arith.divf %547, %548 : vector<4x96xf32>
    %550 = vector.extract_strided_slice %543 {offsets = [0, 96], sizes = [4, 32], strides = [1, 1]} : vector<4x128xf32> to vector<4x32xf32>
    %551 = math.tanh %550 : vector<4x32xf32>
    %552 = vector.extract_strided_slice %549 {offsets = [0, 32], sizes = [4, 32], strides = [1, 1]} : vector<4x96xf32> to vector<4x32xf32>
    %553 = arith.mulf %552, %520 : vector<4x32xf32>
    %554 = vector.extract_strided_slice %549 {offsets = [0, 0], sizes = [4, 32], strides = [1, 1]} : vector<4x96xf32> to vector<4x32xf32>
    %555 = arith.mulf %554, %551 : vector<4x32xf32>
    %556 = arith.addf %553, %555 : vector<4x32xf32>
    %557 = vector.extract_strided_slice %549 {offsets = [0, 64], sizes = [4, 32], strides = [1, 1]} : vector<4x96xf32> to vector<4x32xf32>
    %558 = math.tanh %556 : vector<4x32xf32>
    %559 = arith.mulf %557, %558 : vector<4x32xf32>
    %560 = vector.extract_strided_slice %559 {offsets = [0, 0], sizes = [2, 32], strides = [1, 1]} : vector<4x32xf32> to vector<2x32xf32>
    %c2_i32_192 = arith.constant 2 : i32
    %561 = arith.muli %c6_i32_184, %c2_i32_192 : i32
    %562 = arith.index_cast %561 : i32 to index
    %c0_193 = arith.constant 0 : index
    %563 = vector.load %arg11[%562, %c0_193] : memref<16x64xf32, #tpu.memory_space<vmem>>, vector<2x32xf32>
    tpu.vector_store %arg11[%562, %c0_193], %560 {strides = array<i32>} : memref<16x64xf32, #tpu.memory_space<vmem>>, vector<2x32xf32>,
    %564 = vector.extract_strided_slice %559 {offsets = [2, 0], sizes = [2, 32], strides = [1, 1]} : vector<4x32xf32> to vector<2x32xf32>
    %c2_i32_194 = arith.constant 2 : i32
    %565 = arith.muli %534, %c2_i32_194 : i32
    %566 = arith.index_cast %565 : i32 to index
    %c32_195 = arith.constant 32 : index
    %567 = vector.load %arg11[%566, %c32_195] : memref<16x64xf32, #tpu.memory_space<vmem>>, vector<2x32xf32>
    tpu.vector_store %arg11[%566, %c32_195], %564 {strides = array<i32>} : memref<16x64xf32, #tpu.memory_space<vmem>>, vector<2x32xf32>,
    %568 = tpu.concatenate %559, %559 in 1 : vector<4x32xf32>, vector<4x32xf32> -> vector<4x64xf32>
    %569 = arith.mulf %568, %9 : vector<4x64xf32>
    %c7_i32_196 = arith.constant 7 : i32
    %c7_i32_197 = arith.constant 7 : i32
    %570 = arith.subi %c7_i32_197, %c7_i32_196 : i32
    %c2_i32_198 = arith.constant 2 : i32
    %571 = arith.muli %c7_i32_196, %c2_i32_198 : i32
    %572 = arith.index_cast %571 : i32 to index
    %c0_199 = arith.constant 0 : index
    %573 = vector.load %arg10[%572, %c0_199] : memref<16x256xf32, #tpu.memory_space<vmem>>, vector<2x128xf32>
    %c2_i32_200 = arith.constant 2 : i32
    %574 = arith.muli %570, %c2_i32_200 : i32
    %575 = arith.index_cast %574 : i32 to index
    %c128_201 = arith.constant 128 : index
    %576 = vector.load %arg10[%575, %c128_201] : memref<16x256xf32, #tpu.memory_space<vmem>>, vector<2x128xf32>
    %577 = tpu.concatenate %573, %576 in 0 : vector<2x128xf32>, vector<2x128xf32> -> vector<4x128xf32>
    %cst_202 = arith.constant dense<0.000000e+00> : vector<4x128xf32>
    %578 = tpu.matmul %569, %315, %cst_202 {dimension_numbers = #tpu.dot_dimension_numbers<[1], [0], [0], [1], [0, 0, 1, 1], [], []>} : vector<4x64xf32>, vector<64x128xf32>, vector<4x128xf32> -> vector<4x128xf32>
    %579 = arith.addf %577, %578 : vector<4x128xf32>
    %580 = vector.extract_strided_slice %579 {offsets = [0, 0], sizes = [4, 96], strides = [1, 1]} : vector<4x128xf32> to vector<4x96xf32>
    %581 = arith.negf %580 : vector<4x96xf32>
    %582 = math.exp %581 : vector<4x96xf32>
    %cst_203 = arith.constant 1.000000e+00 : f32
    %583 = vector.broadcast %cst_203 : f32 to vector<4x96xf32>
    %584 = arith.addf %583, %582 : vector<4x96xf32>
    %585 = arith.divf %583, %584 : vector<4x96xf32>
    %586 = vector.extract_strided_slice %579 {offsets = [0, 96], sizes = [4, 32], strides = [1, 1]} : vector<4x128xf32> to vector<4x32xf32>
    %587 = math.tanh %586 : vector<4x32xf32>
    %588 = vector.extract_strided_slice %585 {offsets = [0, 32], sizes = [4, 32], strides = [1, 1]} : vector<4x96xf32> to vector<4x32xf32>
    %589 = arith.mulf %588, %556 : vector<4x32xf32>
    %590 = vector.extract_strided_slice %585 {offsets = [0, 0], sizes = [4, 32], strides = [1, 1]} : vector<4x96xf32> to vector<4x32xf32>
    %591 = arith.mulf %590, %587 : vector<4x32xf32>
    %592 = arith.addf %589, %591 : vector<4x32xf32>
    %593 = vector.extract_strided_slice %585 {offsets = [0, 64], sizes = [4, 32], strides = [1, 1]} : vector<4x96xf32> to vector<4x32xf32>
    %594 = math.tanh %592 : vector<4x32xf32>
    %595 = arith.mulf %593, %594 : vector<4x32xf32>
    %596 = vector.extract_strided_slice %595 {offsets = [0, 0], sizes = [2, 32], strides = [1, 1]} : vector<4x32xf32> to vector<2x32xf32>
    %c2_i32_204 = arith.constant 2 : i32
    %597 = arith.muli %c7_i32_196, %c2_i32_204 : i32
    %598 = arith.index_cast %597 : i32 to index
    %c0_205 = arith.constant 0 : index
    %599 = vector.load %arg11[%598, %c0_205] : memref<16x64xf32, #tpu.memory_space<vmem>>, vector<2x32xf32>
    tpu.vector_store %arg11[%598, %c0_205], %596 {strides = array<i32>} : memref<16x64xf32, #tpu.memory_space<vmem>>, vector<2x32xf32>,
    %600 = vector.extract_strided_slice %595 {offsets = [2, 0], sizes = [2, 32], strides = [1, 1]} : vector<4x32xf32> to vector<2x32xf32>
    %c2_i32_206 = arith.constant 2 : i32
    %601 = arith.muli %570, %c2_i32_206 : i32
    %602 = arith.index_cast %601 : i32 to index
    %c32_207 = arith.constant 32 : index
    %603 = vector.load %arg11[%602, %c32_207] : memref<16x64xf32, #tpu.memory_space<vmem>>, vector<2x32xf32>
    tpu.vector_store %arg11[%602, %c32_207], %600 {strides = array<i32>} : memref<16x64xf32, #tpu.memory_space<vmem>>, vector<2x32xf32>,
    %604 = tpu.concatenate %595, %595 in 1 : vector<4x32xf32>, vector<4x32xf32> -> vector<4x64xf32>
    %605 = arith.mulf %604, %9 : vector<4x64xf32>
    %c8_i32_208 = arith.constant 8 : i32
    %c14 = arith.constant 14 : index
    %c0_209 = arith.constant 0 : index
    %606 = vector.load %arg11[%c14, %c0_209] : memref<16x64xf32, #tpu.memory_space<vmem>>, vector<2x64xf32>
    %c0_210 = arith.constant 0 : index
    %c0_211 = arith.constant 0 : index
    %607 = vector.load %arg7[%c0_210, %c0_211] : memref<64x32xf32, #tpu.memory_space<vmem>>, vector<64x32xf32>
    %cst_212 = arith.constant dense<0.000000e+00> : vector<2x32xf32>
    %608 = tpu.matmul %606, %607, %cst_212 {dimension_numbers = #tpu.dot_dimension_numbers<[1], [0], [0], [1], [0, 0, 1, 1], [], []>} : vector<2x64xf32>, vector<64x32xf32>, vector<2x32xf32> -> vector<2x32xf32>
    %c0_213 = arith.constant 0 : index
    %c0_214 = arith.constant 0 : index
    %609 = vector.load %arg8[%c0_213, %c0_214] : memref<1x32xf32, #tpu.memory_space<vmem>>, vector<1x32xf32>
    %610 = vector.broadcast %609 : vector<1x32xf32> to vector<2x32xf32>
    %611 = arith.addf %608, %610 : vector<2x32xf32>
    %c0_215 = arith.constant 0 : index
    %c0_216 = arith.constant 0 : index
    %612 = vector.load %arg9[%c0_215, %c0_216] : memref<2x32xf32, #tpu.memory_space<vmem>>, vector<2x32xf32>
    tpu.vector_store %arg9[%c0_215, %c0_216], %611 {strides = array<i32>} : memref<2x32xf32, #tpu.memory_space<vmem>>, vector<2x32xf32>,
    return
  }
}

</mosaic_0001>

<bundles_post_ra>
// kernel: audio_lstm_forward.1
= control target key start
LH: loop header
LB: loop body
LE: loop exit
PB: predicated region body
PF: predicated region fallthrough
CT: control target
= control target key end

     0   :  { %14 = vsyncpa [#allocation5], 0  ;;  %s3903_s0 = inlined_call_operand.vmem [shape: f32[16,16], index: 0, kind: input, shape index: {}]   ;;  %s3904_s1 = inlined_call_operand.vmem [shape: f32[16,256], index: 1, kind: input, shape index: {}]   ;;  %s3905_s2 = inlined_call_operand.vmem [shape: f32[1,256], index: 2, kind: input, shape index: {}]   ;;  %s3906_s3 = inlined_call_operand.hbm [shape: f32[64,128], index: 3, kind: input, shape index: {}]   ;;  %s3907_s4 = inlined_call_operand.vmem [shape: f32[64,256], index: 4, kind: input, shape index: {}]   ;;  %s3908_s5 = inlined_call_operand.hbm [shape: f32[1,256], index: 5, kind: input, shape index: {}]   ;;  %s3909_s6 = inlined_call_operand.hbm [shape: f32[64,128], index: 6, kind: input, shape index: {}]   ;;  %s3910_s7 = inlined_call_operand.vmem [shape: f32[64,32], index: 7, kind: input, shape index: {}]   ;;  %s3911_s8 = inlined_call_operand.hbm [shape: f32[1,32], index: 8, kind: input, shape index: {}]   ;;  %s3912_s9 = inlined_call_operand.hbm [shape: f32[2,32], index: 9, kind: output, shape index: {}]  }
   0x1   :  { %15 = vsyncpa [#allocation8], 0 }
   0x2   :  { %16 = vsyncpa [#allocation11], 0 }
   0x3   :  { %17 = vsyncpa [#allocation6], 0  ;;  %s3299_s30 = smov [#allocation7]   ;;  %s3300_s11 = smov [#allocation4]  }
   0x4   :  { %s44_s10 = sshll.u32 %s3299_s30, 4  ;;  %s29_s12 = sshll.u32 %s3300_s11, 4  ;;  %s45_s10 = int_to_ptr.vmem [resolvable:$true] %s44_s10  ;;  %s3363_s12 = int_to_ptr.vmem [resolvable:$true] %s29_s12 }
   0x5   :  { %s3181_s15 = scalar_lea.hbm %s3908_s5, 32 }
   0x6   :  { %p3182_p0 = scmp.ne.s32.totalorder %s3908_s5, %s3181_s15  ;;  %p3185_p1 = scmp.lt.u32.totalorder %s3181_s15, %s3908_s5 }
   0x8   :  { %p3187_p2 = pnand %p3185_p1, %p3182_p0 }
   0xa   :  { %3190 = shalt.err (!%p3187_p2)
}
   0xb   :  { %s3191_s20 = scalar_lea.vmem %s45_s10, 32  ;;  %p3196_p4 = scmp.lt.s32.totalorder %s45_s10, %s45_s10 }
   0xc   :  { %p3192_p3 = scmp.ne.s32.totalorder %s45_s10, %s3191_s20  ;;  %p3197_p5 = scmp.lt.s32.totalorder %s3191_s20, %s3191_s20 }
   0xe   :  { %p3198_p6 = por %p3197_p5, %p3196_p4 }
  0x10   :  { %p3199_p7 = pnand %p3198_p6, %p3192_p3 }
  0x12   :  { %3202 = shalt.err (!%p3199_p7)
}
  0x13   :  { %47 = dma.hbm_to_vmem [thread:$0]  %s3908_s5, 32, %s45_s10, [#allocation8]  }
  0x14   :  { %s3203_s25 = scalar_lea.hbm %s3906_s3, 1024 }
  0x15   :  { %p3204_p8 = scmp.ne.s32.totalorder %s3906_s3, %s3203_s25  ;;  %p3207_p9 = scmp.lt.u32.totalorder %s3203_s25, %s3906_s3 }
  0x17   :  { %p3209_p10 = pnand %p3207_p9, %p3204_p8 }
  0x19   :  { %3212 = shalt.err (!%p3209_p10)
}
  0x1a   :  { %s3213_s30 = scalar_lea.vmem %s3363_s12, 1024  ;;  %p3218_p12 = scmp.lt.s32.totalorder %s3363_s12, %s3363_s12 }
  0x1b   :  { %p3214_p11 = scmp.ne.s32.totalorder %s3363_s12, %s3213_s30  ;;  %p3219_p13 = scmp.lt.s32.totalorder %s3213_s30, %s3213_s30 }
  0x1d   :  { %p3220_p0 = por %p3219_p13, %p3218_p12 }
  0x1f   :  { %p3221_p1 = pnand %p3220_p0, %p3214_p11 }
  0x21   :  { %3224 = shalt.err (!%p3221_p1)
}
  0x22   :  { %s3301_s5 = smov 128   ;;  %s3302_s10 = smov 8  }
  0x23   :  { %35 = dma.hbm_to_vmem [thread:$0]  %s3906_s3, 1024, %s3363_s12, [#allocation5], %s3301_s5, %s3301_s5, %s3302_s10  }
  0x24   :  { %s3303_s14 = smov [#allocation9]   ;;  %s3304_s16 = smov [#allocation10]  }
  0x25   :  { %s53_s15 = sshll.u32 %s3303_s14, 4  ;;  %s68_s17 = sshll.u32 %s3304_s16, 4  ;;  %s54_s15 = int_to_ptr.vmem [resolvable:$true] %s53_s15  ;;  %s69_s17 = int_to_ptr.vmem [resolvable:$true] %s68_s17 }
  0x26   :  { %s3225_s20 = scalar_lea.hbm %s3909_s6, 1024 }
  0x27   :  { %p3226_p2 = scmp.ne.s32.totalorder %s3909_s6, %s3225_s20  ;;  %p3229_p3 = scmp.lt.u32.totalorder %s3225_s20, %s3909_s6 }
  0x29   :  { %p3231_p4 = pnand %p3229_p3, %p3226_p2 }
  0x2b   :  { %3234 = shalt.err (!%p3231_p4)
}
  0x2c   :  { %s3235_s3 = scalar_lea.vmem %s54_s15, 1024  ;;  %p3240_p6 = scmp.lt.s32.totalorder %s54_s15, %s54_s15 }
  0x2d   :  { %p3236_p5 = scmp.ne.s32.totalorder %s54_s15, %s3235_s3  ;;  %p3241_p7 = scmp.lt.s32.totalorder %s3235_s3, %s3235_s3 }
  0x2f   :  { %p3242_p8 = por %p3241_p7, %p3240_p6 }
  0x31   :  { %p3243_p9 = pnand %p3242_p8, %p3236_p5 }
  0x33   :  { %3246 = shalt.err (!%p3243_p9)
}
  0x34   :  { %59 = dma.hbm_to_vmem [thread:$0]  %s3909_s6, 1024, %s54_s15, [#allocation8], %s3301_s5, %s3301_s5, %s3302_s10  }
  0x35   :  { %s3247_s28 = scalar_lea.hbm %s3911_s8, 16 }
  0x36   :  { %p3248_p10 = scmp.ne.s32.totalorder %s3911_s8, %s3247_s28  ;;  %p3251_p11 = scmp.lt.u32.totalorder %s3247_s28, %s3911_s8 }
  0x38   :  { %p3253_p12 = pnand %p3251_p11, %p3248_p10 }
  0x3a   :  { %3256 = shalt.err (!%p3253_p12)
}
  0x3b   :  { %s3257_s14 = scalar_lea.vmem %s69_s17, 16  ;;  %s3261_s16 = scalar_lea.vmem %s69_s17, 32 }
  0x3c   :  { %p3258_p13 = scmp.ne.s32.totalorder %s69_s17, %s3257_s14  ;;  %p3262_p0 = scmp.lt.s32.totalorder %s69_s17, %s69_s17 }
  0x3d   :  { %p3263_p1 = scmp.lt.s32.totalorder %s3261_s16, %s3257_s14 }
  0x3f   :  { %p3264_p2 = por %p3263_p1, %p3262_p0 }
  0x41   :  { %p3265_p3 = pnand %p3264_p2, %p3258_p13 }
  0x43   :  { %3268 = shalt.err (!%p3265_p3)
}
  0x44   :  { %71 = dma.hbm_to_vmem [thread:$0]  %s3911_s8, 16, %s69_s17, [#allocation11]  }
  0x45   :  { %3291 = dma.done.wait [#allocation5], 1024  }
  0x46   :  { %3292 = vsyncadd [#allocation5], 4294966272 }
  0x47   :  { %3293 = dma.done.wait [#allocation8], 1056  }
  0x48   :  { %3294 = vsyncadd [#allocation8], 4294966240 }
  0x49   :  { %3295 = dma.done.wait [#allocation11], 16  }
  0x4a   :  { %3296 = vsyncadd [#allocation11], 4294967280  ;;  %v3305_v0 = vmov 0.0   ;;  %v3306_v1 = vmov 0.0|0.0   ;;  %vm3307_vm0 = vmmov 0   ;;  %v97_v2 = vld [vmem:[%s3904_s1 + $0x8] sm:$0xff]  ;;  %v84_v22 = vlaneseq }
  0x4b   :  { %183 = vmatprep.mubr.f32.mxu0 %v3305_v0  ;;  %2819 = vmatprep.subr.bf16.mxu1 %v3306_v1  ;;  %v99_v3 = vld [vmem:[%s3904_s1 + $0x18] sm:$0xff]  ;;  %v96_v4 = vld [vmem:[%s3904_s1] sm:$0xff]  ;;  %v98_v6 = vld [vmem:[%s3904_s1 + $0x10] sm:$0xff]  ;;  %vm112_vm1 = vcmask 130048   ;;  %vm213_vm2 = vcmask 1041408   ;;  %s3309_s12 = smov 96  }
  0x4c   :  { %2508 = vmatprep.mubr.msk.f32.mxu1 %vm3307_vm0, %v3305_v0  ;;  %v2815_v5 = vpack.c.bf16 %v99_v3, %v97_v2  ;;  %v200_v7 = vld [vmem:[#allocation4] sm:$0xff]  ;;  %v2817_v8 = vpack.c.bf16 %v98_v6, %v96_v4  ;;  %v201_v9 = vld [vmem:[#allocation4 + $0x8] sm:$0xff]  ;;  %v202_v10 = vld [vmem:[#allocation4 + $0x10] sm:$0xff]  ;;  %v3481_v23 = vshrl.u32 %v84_v22, 7  ;;  %s3310_s25 = smov 64   ;;  %v87_v57 = vand.u32 127, %v84_v22 }
  0x4d   :  { %v3434_v11 = vpack.c.bf16 %v201_v9, %v200_v7  ;;  %v203_v12 = vld [vmem:[#allocation4 + $0x18] sm:$0xff]  ;;  %v94_v13 = vld [vmem:[%s3903_s0] sm:$0xff]  ;;  %v204_v15 = vld [vmem:[#allocation4 + $0x20] sm:$0xff]  ;;  %vm3311_vm6 = vmmov 1   ;;  %vm323_vm8 = vcmask 519426   ;;  %vm318_vm9 = vcmask 254976  }
  0x4e   :  { %2816 = vmatprep.subr.bf16.mxu0 %v2815_v5  ;;  %v3440_v14 = vpack.c.bf16 %v203_v12, %v202_v10  ;;  %v205_v16 = vld [vmem:[#allocation4 + $0x28] sm:$0xff]  ;;  %v95_v17 = vld [vmem:[%s3903_s0 + $0x8] sm:$0xff]  ;;  %v206_v19 = vld [vmem:[#allocation4 + $0x30] sm:$0xff]  ;;  %v104_v24 = vsub.s32 0, %v3481_v23  ;;  %v108_v26 = vsub.s32 1, %v3481_v23  ;;  %vm88_vm3 = vcmp.lt.s32.totalorder %v3481_v23, 2 }
  0x4f   :  { %2818 = vmatpush1.bf16.msra.mxu0 %v2817_v8  ;;  %2821 = vmatpush3.bf16.msra.mxu1 %v3434_v11  ;;  %v3451_v18 = vpack.c.bf16 %v205_v16, %v204_v15  ;;  %v207_v20 = vld [vmem:[#allocation4 + $0x38] sm:$0xff]  ;;  %v100_v25 = vld [vmem:[%s3905_s2] sm:$0x3]  ;;  %s3308_s2 = smov 32   ;;  %vm89_vm4 = vcmp.lt.s32.totalorder %v87_v57, 32  ;;  %vm325_vm10 = vcmask 261120  }
  0x50   :  { %2831 = vmatprep.subr.bf16.mxu0 %v3306_v1  ;;  %2822 = vmatprep.subr.bf16.mxu1 %v3306_v1  ;;  %v3460_v21 = vpack.c.bf16 %v207_v20, %v206_v19  ;;  %v105_v27 = vrot.slane %v100_v25, %v104_v24  ;;  %v109_v28 = vrot.slane %v100_v25, %v108_v26  ;;  %vm90_vm5 = vmxor %vm88_vm3, %vm89_vm4  ;;  %vm215_vm11 = vcmask 523264  }
  0x51   :  { %vm91_vm7 = vmxor %vm90_vm5, %vm3311_vm6 }
  0x52   :  { %2303 = vmatmul.mubr.msk.f32.vlgmr.msra.gmra.mrb[0].mxu0 %vm112_vm1, %v94_v13  ;;  %v3500_v58 = vsel %vm91_vm7, 1.0, %v3305_v0 }
  0x53   :  { %189 = vmatprep.mubr.f32.mxu0 %v3305_v0  ;;  %2833 = vmatpush3.bf16.msra.mxu0 %v3434_v11 }
  0x54   :  { %2824 = vmatpush3.bf16.msra.mxu1 %v3440_v14  ;;  %2834 = vmatprep.subr.bf16.mxu0 %v3306_v1 }
  0x55   :  { %2825 = vmatprep.subr.bf16.mxu1 %v3306_v1 }
  0x56   :  { %2304 = vmatmul.mubr.msk.f32.gmra.mrb[2].mxu0 %vm112_vm1, %v95_v17 }
  0x57   :  { %2836 = vmatpush3.bf16.msra.mxu0 %v3440_v14  ;;  %2527 = vmatprep.mubr.msk.f32.mxu0 %vm3307_vm0, %v3305_v0 }
  0x58   :  { %2827 = vmatpush3.bf16.msra.mxu1 %v3451_v18  ;;  %2837 = vmatprep.subr.bf16.mxu0 %v3306_v1 }
  0x59   :  { %2828 = vmatprep.subr.bf16.mxu1 %v3306_v1 }
  0x5b   :  { %2839 = vmatpush3.bf16.msra.mxu0 %v3451_v18 }
  0x5c   :  { %2830 = vmatpush3.bf16.msra.mxu1 %v3460_v21  ;;  %2840 = vmatprep.subr.bf16.mxu0 %v3306_v1 }
  0x5d   :  { %2843 = vmatprep.subr.bf16.mxu1 %v3306_v1 }
  0x5f   :  { %2509 = vmatmul.mubr.f32.vlgmr.msra.gmra.mrb[0].mxu1 %v3305_v0  ;;  %2842 = vmatpush3.bf16.msra.mxu0 %v3460_v21 }
  0x60   :  { %2845 = vmatpush3.bf16.msra.mxu1 %v3434_v11  ;;  %2546 = vmatprep.mubr.msk.f32.mxu1 %vm3307_vm0, %v3305_v0 }
  0x61   :  { %2846 = vmatprep.subr.bf16.mxu1 %v3306_v1  ;;  %2855 = vmatprep.subr.bf16.mxu0 %v3306_v1 }
  0x64   :  { %2848 = vmatpush3.bf16.msra.mxu1 %v3440_v14 }
  0x65   :  { %2849 = vmatprep.subr.bf16.mxu1 %v3306_v1 }
  0x68   :  { %2851 = vmatpush3.bf16.msra.mxu1 %v3451_v18 }
  0x69   :  { %2852 = vmatprep.subr.bf16.mxu1 %v3306_v1 }
  0x6c   :  { %2854 = vmatpush3.bf16.msra.mxu1 %v3460_v21 }
  0x6d   :  { %2867 = vmatprep.subr.bf16.mxu1 %v3306_v1 }
 0x125   :  { %v185_v29 = vpop.f32.mrb[0].mxu0 }
 0x126   :  { %v186_v30 = vadd.f32 %v185_v29, %v105_v27  ;;  %v187_v31 = vpop.f32.mrb[1].mxu0 }
 0x127   :  { %v188_v32 = vadd.f32 %v187_v31, %v109_v28 }
 0x128   :  { %196 = vst [vmem:[#allocation2] sm:$0xff] %v186_v30 }
 0x129   :  { %197 = vst [vmem:[#allocation2 + $0x8] sm:$0xff] %v188_v32  ;;  %v191_v33 = vpop.f32.mrb[2].mxu0 }
 0x12a   :  { %v192_v34 = vadd.f32 %v191_v33, %v105_v27  ;;  %v193_v35 = vpop.f32.mrb[3].mxu0 }
 0x12b   :  { %v194_v36 = vadd.f32 %v193_v35, %v109_v28 }
 0x12c   :  { %198 = vst [vmem:[#allocation2 + $0x10] sm:$0xff] %v192_v34 }
 0x12d   :  { %199 = vst [vmem:[#allocation2 + $0x18] sm:$0xff] %v194_v36 }
 0x12f   :  { %v208_v41 = vld [vmem:[#allocation2] sm:$0x3]  ;;  %v328_v2 = vld [vmem:[#allocation2] sm:$0xc]  ;;  %v446_v33 = vld [vmem:[#allocation2] sm:$0x30] }
 0x130   :  { %v331_v4 = vrot.slane %v328_v2, 2  ;;  %v449_v35 = vrot.slane %v446_v33, 4 }
 0x132   :  { %v285_v37 = vpop.f32.mrb[0].mxu1 }
 0x133   :  { %v2510_v38 = vpop.f32.mrb[1].mxu1 }
 0x134   :  { %v209_v39 = vld [vmem:[#allocation2 + $0x18] sm:$0xc0]  ;;  %v329_v63 = vld [vmem:[#allocation2 + $0x18] sm:$0x30]  ;;  %v447_v34 = vld [vmem:[#allocation2 + $0x18] sm:$0xc] }
 0x135   :  { %v211_v40 = vrot.slane %v209_v39, 4  ;;  %v334_v3 = vrot.slane %v329_v63, 2  ;;  %v451_v36 = vsel %vm213_vm2, %v449_v35, %v447_v34  ;;  %v562_v57 = vld [vmem:[#allocation2 + $0x18] sm:$0x3] }
 0x137   :  { %v214_v42 = vsel %vm213_vm2, %v208_v41, %v211_v40  ;;  %v336_v5 = vsel %vm213_vm2, %v331_v4, %v334_v3 }
 0x138   :  { %v289_v43 = vadd.f32 %v285_v37, %v214_v42 }
 0x13a   :  { %3053 = vtanh.f32 %v289_v43  ;;  %v2305_v45 = vmul.f32 -1.442695, %v289_v43 }
 0x13c   :  { %3055 = vpow2.f32 %v2305_v45 }
 0x144   :  { %v3054_v44 = vpop.eup %3053 }
 0x145   :  { %299 = vrot.lane.b32.xlu0 %v3054_v44, %s3308_s2 }
 0x146   :  { %v3056_v46 = vpop.eup %3055 }
 0x147   :  { %v293_v47 = vadd.f32 1.0, %v3056_v46 }
 0x149   :  { %3057 = vrcp.f32 %v293_v47 }
 0x153   :  { %v3058_v48 = vpop.eup %3057 }
 0x154   :  { %v297_v51 = vmul.f32 0.0, %v3058_v48 }
 0x1b7   :  { %v300_v49 = vpop.permute.xlu0 %299 }
 0x1b8   :  { %v302_v50 = vmul.f32 %v3058_v48, %v300_v49 }
 0x1ba   :  { %304 = vrot.lane.b32.xlu0 %v302_v50, %s3308_s2 }
 0x22c   :  { %v305_v52 = vpop.permute.xlu0 %304 }
 0x22d   :  { %v307_v53 = vadd.f32 %v305_v52, %v297_v51 }
 0x22f   :  { %3059 = vtanh.f32 %v307_v53 }
 0x239   :  { %v3060_v54 = vpop.eup %3059 }
 0x23a   :  { %310 = vrot.lane.b32.xlu1 %v3060_v54, %s3308_s2 }
 0x2ac   :  { %v311_v55 = vpop.permute.xlu1 %310 }
 0x2ad   :  { %v313_v56 = vmul.f32 %v3058_v48, %v311_v55 }
 0x2af   :  { %320 = vrot.lane.b32.xlu0 %v313_v56, %s3309_s12  ;;  %315 = vrot.lane.b32.xlu1 %v313_v56, %s3310_s25 }
 0x321   :  { %v321_v59 = vpop.permute.xlu0 %320  ;;  %v316_v60 = vpop.permute.xlu1 %315 }
 0x322   :  { %324 = vst.msk [vmem:[#allocation3 + $0xc] sm:$0xc] %vm323_vm8, %v321_v59  ;;  %v326_v61 = vsel %vm325_vm10, %v316_v60, %v321_v59  ;;  %v561_v59 = vld [vmem:[#allocation2] sm:$0xc0] }
 0x323   :  { %319 = vst.msk [vmem:[#allocation3] sm:$0x3] %vm318_vm9, %v316_v60  ;;  %v327_v62 = vmul.f32 %v3500_v58, %v326_v61  ;;  %v567_v60 = vrot.slane %v562_v57, 6  ;;  %v564_v61 = vrot.slane %v561_v59, 6 }
 0x325   :  { %2528 = vmatmul.mubr.msk.f32.vlgmr.msra.gmra.mrb[4].mxu0 %vm215_vm11, %v327_v62  ;;  %v569_v62 = vsel %vm213_vm2, %v564_v61, %v567_v60 }
 0x326   :  { %2857 = vmatpush3.bf16.msra.mxu0 %v3434_v11  ;;  %2565 = vmatprep.mubr.msk.f32.mxu0 %vm3307_vm0, %v3305_v0 }
 0x327   :  { %2858 = vmatprep.subr.bf16.mxu0 %v3306_v1 }
 0x32a   :  { %2860 = vmatpush3.bf16.msra.mxu0 %v3440_v14 }
 0x32b   :  { %2861 = vmatprep.subr.bf16.mxu0 %v3306_v1 }
 0x32e   :  { %2863 = vmatpush3.bf16.msra.mxu0 %v3451_v18 }
 0x32f   :  { %2864 = vmatprep.subr.bf16.mxu0 %v3306_v1 }
 0x332   :  { %2866 = vmatpush3.bf16.msra.mxu0 %v3460_v21 }
 0x333   :  { %2879 = vmatprep.subr.bf16.mxu0 %v3306_v1 }
 0x3f8   :  { %v406_v6 = vpop.f32.mrb[4].mxu0 }
 0x3f9   :  { %v410_v7 = vadd.f32 %v406_v6, %v336_v5  ;;  %v2529_v8 = vpop.f32.mrb[5].mxu0 }
 0x3fb   :  { %3061 = vtanh.f32 %v410_v7  ;;  %v2307_v10 = vmul.f32 -1.442695, %v410_v7 }
 0x3fd   :  { %3063 = vpow2.f32 %v2307_v10 }
 0x405   :  { %v3062_v9 = vpop.eup %3061 }
 0x406   :  { %420 = vrot.lane.b32.xlu1 %v3062_v9, %s3308_s2 }
 0x407   :  { %v3064_v12 = vpop.eup %3063 }
 0x408   :  { %v414_v13 = vadd.f32 1.0, %v3064_v12 }
 0x40a   :  { %3065 = vrcp.f32 %v414_v13 }
 0x414   :  { %v3066_v15 = vpop.eup %3065 }
 0x415   :  { %v418_v19 = vmul.f32 %v3066_v15, %v307_v53 }
 0x478   :  { %v421_v16 = vpop.permute.xlu1 %420 }
 0x479   :  { %v423_v17 = vmul.f32 %v3066_v15, %v421_v16 }
 0x47b   :  { %425 = vrot.lane.b32.xlu0 %v423_v17, %s3308_s2 }
 0x4ed   :  { %v426_v20 = vpop.permute.xlu0 %425 }
 0x4ee   :  { %v428_v22 = vadd.f32 %v426_v20, %v418_v19 }
 0x4f0   :  { %3067 = vtanh.f32 %v428_v22 }
 0x4fa   :  { %v3068_v25 = vpop.eup %3067 }
 0x4fb   :  { %431 = vrot.lane.b32.xlu1 %v3068_v25, %s3308_s2 }
 0x56d   :  { %v432_v27 = vpop.permute.xlu1 %431 }
 0x56e   :  { %v434_v28 = vmul.f32 %v3066_v15, %v432_v27 }
 0x570   :  { %440 = vrot.lane.b32.xlu1 %v434_v28, %s3309_s12  ;;  %436 = vrot.lane.b32.xlu0 %v434_v28, %s3310_s25  ;;  %v680_v28 = vld [vmem:[#allocation2 + $0x8] sm:$0xc0] }
 0x5e2   :  { %v441_v29 = vpop.permute.xlu1 %440  ;;  %v437_v30 = vpop.permute.xlu0 %436 }
 0x5e3   :  { %443 = vst.msk [vmem:[#allocation3 + $0xa] sm:$0xc] %vm323_vm8, %v441_v29  ;;  %v444_v31 = vsel %vm325_vm10, %v437_v30, %v441_v29  ;;  %v682_v29 = vrot.slane %v680_v28, 4 }
 0x5e4   :  { %439 = vst.msk [vmem:[#allocation3 + $0x2] sm:$0x3] %vm318_vm9, %v437_v30  ;;  %v445_v32 = vmul.f32 %v3500_v58, %v444_v31  ;;  %v679_v30 = vld [vmem:[#allocation2 + $0x10] sm:$0x3] }
 0x5e5   :  { %v684_v31 = vsel %vm213_vm2, %v679_v30, %v682_v29 }
 0x5e6   :  { %2547 = vmatmul.mubr.msk.f32.vlgmr.msra.gmra.mrb[2].mxu1 %vm215_vm11, %v445_v32 }
 0x5e7   :  { %2869 = vmatpush3.bf16.msra.mxu1 %v3434_v11  ;;  %2584 = vmatprep.mubr.msk.f32.mxu1 %vm3307_vm0, %v3305_v0 }
 0x5e8   :  { %2870 = vmatprep.subr.bf16.mxu1 %v3306_v1 }
 0x5eb   :  { %2872 = vmatpush3.bf16.msra.mxu1 %v3440_v14 }
 0x5ec   :  { %2873 = vmatprep.subr.bf16.mxu1 %v3306_v1 }
 0x5ef   :  { %2875 = vmatpush3.bf16.msra.mxu1 %v3451_v18 }
 0x5f0   :  { %2876 = vmatprep.subr.bf16.mxu1 %v3306_v1 }
 0x5f3   :  { %2878 = vmatpush3.bf16.msra.mxu1 %v3460_v21 }
 0x5f4   :  { %2891 = vmatprep.subr.bf16.mxu1 %v3306_v1 }
 0x6b9   :  { %v521_v37 = vpop.f32.mrb[2].mxu1 }
 0x6ba   :  { %v525_v38 = vadd.f32 %v521_v37, %v451_v36  ;;  %v2548_v39 = vpop.f32.mrb[3].mxu1 }
 0x6bc   :  { %3069 = vtanh.f32 %v525_v38  ;;  %v2309_v41 = vmul.f32 -1.442695, %v525_v38 }
 0x6be   :  { %3071 = vpow2.f32 %v2309_v41 }
 0x6c6   :  { %v3070_v40 = vpop.eup %3069 }
 0x6c7   :  { %535 = vrot.lane.b32.xlu0 %v3070_v40, %s3308_s2 }
 0x6c8   :  { %v3072_v42 = vpop.eup %3071 }
 0x6c9   :  { %v529_v43 = vadd.f32 1.0, %v3072_v42 }
 0x6cb   :  { %3073 = vrcp.f32 %v529_v43 }
 0x6d5   :  { %v3074_v44 = vpop.eup %3073 }
 0x6d6   :  { %v533_v47 = vmul.f32 %v3074_v44, %v428_v22 }
 0x739   :  { %v536_v45 = vpop.permute.xlu0 %535 }
 0x73a   :  { %v538_v46 = vmul.f32 %v3074_v44, %v536_v45 }
 0x73c   :  { %540 = vrot.lane.b32.xlu1 %v538_v46, %s3308_s2 }
 0x7ae   :  { %v541_v48 = vpop.permute.xlu1 %540 }
 0x7af   :  { %v543_v49 = vadd.f32 %v541_v48, %v533_v47 }
 0x7b1   :  { %3075 = vtanh.f32 %v543_v49 }
 0x7bb   :  { %v3076_v50 = vpop.eup %3075 }
 0x7bc   :  { %546 = vrot.lane.b32.xlu0 %v3076_v50, %s3308_s2 }
 0x82e   :  { %v547_v51 = vpop.permute.xlu0 %546 }
 0x82f   :  { %v549_v52 = vmul.f32 %v3074_v44, %v547_v51 }
 0x831   :  { %555 = vrot.lane.b32.xlu0 %v549_v52, %s3309_s12  ;;  %551 = vrot.lane.b32.xlu1 %v549_v52, %s3310_s25  ;;  %v794_v52 = vld [vmem:[#allocation2 + $0x10] sm:$0xc] }
 0x8a3   :  { %v556_v53 = vpop.permute.xlu0 %555  ;;  %v552_v54 = vpop.permute.xlu1 %551 }
 0x8a4   :  { %558 = vst.msk [vmem:[#allocation3 + $0x8] sm:$0xc] %vm323_vm8, %v556_v53  ;;  %v559_v55 = vsel %vm325_vm10, %v552_v54, %v556_v53  ;;  %v795_v53 = vld [vmem:[#allocation2 + $0x8] sm:$0x30] }
 0x8a5   :  { %554 = vst.msk [vmem:[#allocation3 + $0x4] sm:$0x3] %vm318_vm9, %v552_v54  ;;  %v560_v56 = vmul.f32 %v3500_v58, %v559_v55  ;;  %v800_v54 = vrot.slane %v795_v53, 2 }
 0x8a7   :  { %2566 = vmatmul.mubr.msk.f32.vlgmr.msra.gmra.mrb[6].mxu0 %vm215_vm11, %v560_v56 }
 0x8a8   :  { %2881 = vmatpush3.bf16.msra.mxu0 %v3434_v11  ;;  %2603 = vmatprep.mubr.msk.f32.mxu0 %vm3307_vm0, %v3305_v0 }
 0x8a9   :  { %2882 = vmatprep.subr.bf16.mxu0 %v3306_v1 }
 0x8ac   :  { %2884 = vmatpush3.bf16.msra.mxu0 %v3440_v14 }
 0x8ad   :  { %2885 = vmatprep.subr.bf16.mxu0 %v3306_v1 }
 0x8b0   :  { %2887 = vmatpush3.bf16.msra.mxu0 %v3451_v18 }
 0x8b1   :  { %2888 = vmatprep.subr.bf16.mxu0 %v3306_v1 }
 0x8b4   :  { %2890 = vmatpush3.bf16.msra.mxu0 %v3460_v21 }
 0x8b5   :  { %2903 = vmatprep.subr.bf16.mxu0 %v3306_v1 }
 0x97a   :  { %v639_v63 = vpop.f32.mrb[6].mxu0 }
 0x97b   :  { %v643_v2 = vadd.f32 %v639_v63, %v569_v62  ;;  %v2567_v3 = vpop.f32.mrb[7].mxu0 }
 0x97d   :  { %3077 = vtanh.f32 %v643_v2  ;;  %v2311_v5 = vmul.f32 -1.442695, %v643_v2 }
 0x97f   :  { %3079 = vpow2.f32 %v2311_v5 }
 0x987   :  { %v3078_v4 = vpop.eup %3077 }
 0x988   :  { %653 = vrot.lane.b32.xlu1 %v3078_v4, %s3308_s2 }
 0x989   :  { %v3080_v6 = vpop.eup %3079 }
 0x98a   :  { %v647_v7 = vadd.f32 1.0, %v3080_v6 }
 0x98c   :  { %3081 = vrcp.f32 %v647_v7 }
 0x996   :  { %v3082_v8 = vpop.eup %3081 }
 0x997   :  { %v651_v12 = vmul.f32 %v3082_v8, %v543_v49 }
 0x9fa   :  { %v654_v9 = vpop.permute.xlu1 %653 }
 0x9fb   :  { %v656_v10 = vmul.f32 %v3082_v8, %v654_v9 }
 0x9fd   :  { %658 = vrot.lane.b32.xlu0 %v656_v10, %s3308_s2 }
 0xa6f   :  { %v659_v13 = vpop.permute.xlu0 %658 }
 0xa70   :  { %v661_v15 = vadd.f32 %v659_v13, %v651_v12  ;;  %v912_v13 = vld [vmem:[#allocation2 + $0x10] sm:$0x30] }
 0xa72   :  { %3083 = vtanh.f32 %v661_v15 }
 0xa7c   :  { %v3084_v16 = vpop.eup %3083 }
 0xa7d   :  { %664 = vrot.lane.b32.xlu1 %v3084_v16, %s3308_s2  ;;  %v913_v16 = vld [vmem:[#allocation2 + $0x8] sm:$0xc] }
 0xaef   :  { %v665_v17 = vpop.permute.xlu1 %664 }
 0xaf0   :  { %v667_v19 = vmul.f32 %v3082_v8, %v665_v17 }
 0xaf2   :  { %673 = vrot.lane.b32.xlu1 %v667_v19, %s3309_s12  ;;  %669 = vrot.lane.b32.xlu0 %v667_v19, %s3310_s25 }
 0xb64   :  { %v674_v20 = vpop.permute.xlu1 %673  ;;  %v670_v22 = vpop.permute.xlu0 %669 }
 0xb65   :  { %676 = vst.msk [vmem:[#allocation3 + $0x6] sm:$0xc] %vm323_vm8, %v674_v20  ;;  %v677_v25 = vsel %vm325_vm10, %v670_v22, %v674_v20 }
 0xb66   :  { %672 = vst.msk [vmem:[#allocation3 + $0x6] sm:$0x3] %vm318_vm9, %v670_v22  ;;  %v678_v27 = vmul.f32 %v3500_v58, %v677_v25 }
 0xb68   :  { %2585 = vmatmul.mubr.msk.f32.vlgmr.msra.gmra.mrb[4].mxu1 %vm215_vm11, %v678_v27 }
 0xb69   :  { %2893 = vmatpush3.bf16.msra.mxu1 %v3434_v11  ;;  %2622 = vmatprep.mubr.msk.f32.mxu1 %vm3307_vm0, %v3305_v0 }
 0xb6a   :  { %2894 = vmatprep.subr.bf16.mxu1 %v3306_v1 }
 0xb6d   :  { %2896 = vmatpush3.bf16.msra.mxu1 %v3440_v14 }
 0xb6e   :  { %2897 = vmatprep.subr.bf16.mxu1 %v3306_v1 }
 0xb71   :  { %2899 = vmatpush3.bf16.msra.mxu1 %v3451_v18 }
 0xb72   :  { %2900 = vmatprep.subr.bf16.mxu1 %v3306_v1 }
 0xb75   :  { %2902 = vmatpush3.bf16.msra.mxu1 %v3460_v21 }
 0xc3b   :  { %v754_v32 = vpop.f32.mrb[4].mxu1 }
 0xc3c   :  { %v758_v33 = vadd.f32 %v754_v32, %v684_v31  ;;  %v2586_v34 = vpop.f32.mrb[5].mxu1 }
 0xc3e   :  { %3085 = vtanh.f32 %v758_v33  ;;  %v2313_v36 = vmul.f32 -1.442695, %v758_v33 }
 0xc40   :  { %3087 = vpow2.f32 %v2313_v36 }
 0xc48   :  { %v3086_v35 = vpop.eup %3085 }
 0xc49   :  { %768 = vrot.lane.b32.xlu0 %v3086_v35, %s3308_s2 }
 0xc4a   :  { %v3088_v37 = vpop.eup %3087 }
 0xc4b   :  { %v762_v38 = vadd.f32 1.0, %v3088_v37 }
 0xc4d   :  { %3089 = vrcp.f32 %v762_v38 }
 0xc57   :  { %v3090_v39 = vpop.eup %3089 }
 0xc58   :  { %v766_v42 = vmul.f32 %v3090_v39, %v661_v15  ;;  %v915_v15 = vrot.slane %v912_v13, 4 }
 0xc5a   :  { %v917_v17 = vsel %vm213_vm2, %v915_v15, %v913_v16  ;;  %v1155_v15 = vld [vmem:[%s3907_s4 + $0x50] sm:$0xff]  ;;  %v1158_v16 = vld [vmem:[%s3907_s4 + $0x68] sm:$0xff] }
 0xcbb   :  { %v769_v40 = vpop.permute.xlu0 %768 }
 0xcbc   :  { %v771_v41 = vmul.f32 %v3090_v39, %v769_v40 }
 0xcbe   :  { %773 = vrot.lane.b32.xlu1 %v771_v41, %s3308_s2 }
 0xd30   :  { %v774_v43 = vpop.permute.xlu1 %773 }
 0xd31   :  { %v776_v44 = vadd.f32 %v774_v43, %v766_v42  ;;  %v1027_v43 = vld [vmem:[#allocation2 + $0x10] sm:$0xc0] }
 0xd33   :  { %3091 = vtanh.f32 %v776_v44 }
 0xd3d   :  { %v3092_v45 = vpop.eup %3091 }
 0xd3e   :  { %779 = vrot.lane.b32.xlu0 %v3092_v45, %s3308_s2  ;;  %v1030_v45 = vrot.slane %v1027_v43, 6 }
 0xdb0   :  { %v780_v46 = vpop.permute.xlu0 %779 }
 0xdb1   :  { %v782_v47 = vmul.f32 %v3090_v39, %v780_v46 }
 0xdb3   :  { %788 = vrot.lane.b32.xlu0 %v782_v47, %s3309_s12  ;;  %784 = vrot.lane.b32.xlu1 %v782_v47, %s3310_s25 }
 0xe25   :  { %v789_v48 = vpop.permute.xlu0 %788  ;;  %v785_v49 = vpop.permute.xlu1 %784 }
 0xe26   :  { %791 = vst.msk [vmem:[#allocation3 + $0x4] sm:$0xc] %vm323_vm8, %v789_v48  ;;  %v792_v50 = vsel %vm325_vm10, %v785_v49, %v789_v48 }
 0xe27   :  { %787 = vst.msk [vmem:[#allocation3 + $0x8] sm:$0x3] %vm318_vm9, %v785_v49  ;;  %v793_v51 = vmul.f32 %v3500_v58, %v792_v50 }
 0xe29   :  { %2604 = vmatmul.mubr.msk.f32.vlgmr.msra.gmra.mrb[8].mxu0 %vm215_vm11, %v793_v51 }
 0xe2a   :  { %2905 = vmatpush3.bf16.msra.mxu0 %v3434_v11  ;;  %2641 = vmatprep.mubr.msk.f32.mxu0 %vm3307_vm0, %v3305_v0  ;;  %v797_v11 = vrot.slane %v794_v52, 2 }
 0xe2b   :  { %2906 = vmatprep.subr.bf16.mxu0 %v3306_v1 }
 0xe2c   :  { %v802_v55 = vsel %vm213_vm2, %v797_v11, %v800_v54 }
 0xe2e   :  { %2908 = vmatpush3.bf16.msra.mxu0 %v3440_v14 }
 0xe2f   :  { %2909 = vmatprep.subr.bf16.mxu0 %v3306_v1 }
 0xe32   :  { %2911 = vmatpush3.bf16.msra.mxu0 %v3451_v18 }
 0xe33   :  { %2912 = vmatprep.subr.bf16.mxu0 %v3306_v1 }
 0xe36   :  { %2914 = vmatpush3.bf16.msra.mxu0 %v3460_v21 }
 0xe37   :  { %2931 = vmatprep.subr.bf16.mxu0 %v3306_v1 }
 0xefc   :  { %v872_v56 = vpop.f32.mrb[8].mxu0 }
 0xefd   :  { %v876_v57 = vadd.f32 %v872_v56, %v802_v55  ;;  %v2605_v59 = vpop.f32.mrb[9].mxu0 }
 0xeff   :  { %3093 = vtanh.f32 %v876_v57  ;;  %v2315_v18 = vmul.f32 -1.442695, %v876_v57 }
 0xf01   :  { %3095 = vpow2.f32 %v2315_v18  ;;  %v1146_v18 = vld [vmem:[%s3907_s4 + $0x8] sm:$0xff] }
 0xf09   :  { %v3094_v14 = vpop.eup %3093 }
 0xf0a   :  { %886 = vrot.lane.b32.xlu1 %v3094_v14, %s3308_s2 }
 0xf0b   :  { %v3096_v60 = vpop.eup %3095 }
 0xf0c   :  { %v880_v61 = vadd.f32 1.0, %v3096_v60  ;;  %v1148_v60 = vld [vmem:[%s3907_s4 + $0x18] sm:$0xff] }
 0xf0e   :  { %3097 = vrcp.f32 %v880_v61  ;;  %v1145_v61 = vld [vmem:[%s3907_s4] sm:$0xff] }
 0xf18   :  { %v3098_v21 = vpop.eup %3097 }
 0xf19   :  { %v884_v2 = vmul.f32 %v3098_v21, %v776_v44  ;;  %v1028_v44 = vld [vmem:[#allocation2 + $0x8] sm:$0x3] }
 0xf1a   :  { %v1033_v46 = vrot.slane %v1028_v44, 6 }
 0xf1c   :  { %v1035_v47 = vsel %vm213_vm2, %v1030_v45, %v1033_v46 }
 0xf7c   :  { %v887_v62 = vpop.permute.xlu1 %886 }
 0xf7d   :  { %v889_v63 = vmul.f32 %v3098_v21, %v887_v62  ;;  %v1147_v62 = vld [vmem:[%s3907_s4 + $0x10] sm:$0xff] }
 0xf7f   :  { %891 = vrot.lane.b32.xlu0 %v889_v63, %s3308_s2  ;;  %v1150_v63 = vld [vmem:[%s3907_s4 + $0x28] sm:$0xff] }
 0xff1   :  { %v892_v3 = vpop.permute.xlu0 %891 }
 0xff2   :  { %v894_v4 = vadd.f32 %v892_v3, %v884_v2  ;;  %v1152_v2 = vld [vmem:[%s3907_s4 + $0x38] sm:$0xff]  ;;  %v2917_v3 = vpack.c.bf16 %v1147_v62, %v1145_v61 }
 0xff4   :  { %3099 = vtanh.f32 %v894_v4 }
 0xffe   :  { %v3100_v5 = vpop.eup %3099 }
 0xfff   :  { %897 = vrot.lane.b32.xlu1 %v3100_v5, %s3308_s2  ;;  %v1149_v5 = vld [vmem:[%s3907_s4 + $0x20] sm:$0xff] }
0x1071   :  { %v898_v6 = vpop.permute.xlu1 %897 }
0x1072   :  { %v900_v7 = vmul.f32 %v3098_v21, %v898_v6  ;;  %v2915_v21 = vpack.c.bf16 %v1148_v60, %v1146_v18  ;;  %v1151_v6 = vld [vmem:[%s3907_s4 + $0x30] sm:$0xff] }
0x1074   :  { %906 = vrot.lane.b32.xlu1 %v900_v7, %s3309_s12  ;;  %902 = vrot.lane.b32.xlu0 %v900_v7, %s3310_s25  ;;  %v2921_v7 = vpack.c.bf16 %v1151_v6, %v1149_v5 }
0x1075   :  { %2916 = vmatprep.subr.bf16.mxu1 %v2915_v21 }
0x10e6   :  { %v907_v8 = vpop.permute.xlu1 %906  ;;  %v903_v9 = vpop.permute.xlu0 %902 }
0x10e7   :  { %909 = vst.msk [vmem:[#allocation3 + $0x2] sm:$0xc] %vm323_vm8, %v907_v8  ;;  %v910_v10 = vsel %vm325_vm10, %v903_v9, %v907_v8 }
0x10e8   :  { %905 = vst.msk [vmem:[#allocation3 + $0xa] sm:$0x3] %vm318_vm9, %v903_v9  ;;  %v911_v12 = vmul.f32 %v3500_v58, %v910_v10  ;;  %v1154_v9 = vld [vmem:[%s3907_s4 + $0x48] sm:$0xff]  ;;  %v1156_v10 = vld [vmem:[%s3907_s4 + $0x58] sm:$0xff] }
0x10e9   :  { %v2923_v13 = vpack.c.bf16 %v1156_v10, %v1154_v9 }
0x10ea   :  { %2623 = vmatmul.mubr.msk.f32.vlgmr.msra.gmra.mrb[6].mxu1 %vm215_vm11, %v911_v12  ;;  %v1153_v12 = vld [vmem:[%s3907_s4 + $0x40] sm:$0xff] }
0x10eb   :  { %1243 = vmatprep.mubr.f32.mxu1 %v3305_v0  ;;  %2918 = vmatpush1.bf16.msra.mxu1 %v2917_v3 }
0x11bd   :  { %v987_v19 = vpop.f32.mrb[6].mxu1 }
0x11be   :  { %v991_v20 = vadd.f32 %v987_v19, %v917_v17  ;;  %v2624_v22 = vpop.f32.mrb[7].mxu1  ;;  %v1160_v17 = vld [vmem:[%s3907_s4 + $0x78] sm:$0xff]  ;;  %v2925_v19 = vpack.c.bf16 %v1155_v15, %v1153_v12 }
0x11bf   :  { %v1157_v22 = vld [vmem:[%s3907_s4 + $0x60] sm:$0xff] }
0x11c0   :  { %3101 = vtanh.f32 %v991_v20  ;;  %v2317_v27 = vmul.f32 -1.442695, %v991_v20  ;;  %v2927_v20 = vpack.c.bf16 %v1160_v17, %v1158_v16 }
0x11c2   :  { %3103 = vpow2.f32 %v2317_v27 }
0x11ca   :  { %v3102_v25 = vpop.eup %3101 }
0x11cb   :  { %1001 = vrot.lane.b32.xlu0 %v3102_v25, %s3308_s2  ;;  %v1159_v25 = vld [vmem:[%s3907_s4 + $0x70] sm:$0xff] }
0x11cc   :  { %v3104_v28 = vpop.eup %3103  ;;  %v2929_v27 = vpack.c.bf16 %v1159_v25, %v1157_v22 }
0x11cd   :  { %v995_v29 = vadd.f32 1.0, %v3104_v28  ;;  %v1260_v28 = vld [vmem:[#allocation9] sm:$0xff] }
0x11cf   :  { %3105 = vrcp.f32 %v995_v29  ;;  %v1261_v29 = vld [vmem:[#allocation9 + $0x8] sm:$0xff] }
0x11d9   :  { %v3106_v30 = vpop.eup %3105 }
0x11da   :  { %v999_v33 = vmul.f32 %v3106_v30, %v894_v4  ;;  %v2919_v4 = vpack.c.bf16 %v1152_v2, %v1150_v63 }
0x11dc   :  { %2920 = vmatprep.subr.bf16.mxu1 %v2919_v4 }
0x11dd   :  { %2922 = vmatpush1.bf16.msra.mxu1 %v2921_v7 }
0x11de   :  { %2924 = vmatprep.subr.bf16.mxu1 %v2923_v13 }
0x11e1   :  { %2926 = vmatpush1.bf16.msra.mxu1 %v2925_v19 }
0x11e2   :  { %2928 = vmatprep.subr.bf16.mxu1 %v2927_v20 }
0x11e5   :  { %2930 = vmatpush1.bf16.msra.mxu1 %v2929_v27 }
0x11e6   :  { %2943 = vmatprep.subr.bf16.mxu1 %v3306_v1 }
0x123d   :  { %v1002_v31 = vpop.permute.xlu0 %1001 }
0x123e   :  { %v1004_v32 = vmul.f32 %v3106_v30, %v1002_v31 }
0x1240   :  { %1006 = vrot.lane.b32.xlu1 %v1004_v32, %s3308_s2 }
0x12b2   :  { %v1007_v34 = vpop.permute.xlu1 %1006 }
0x12b3   :  { %v1009_v35 = vadd.f32 %v1007_v34, %v999_v33  ;;  %v1262_v33 = vld [vmem:[#allocation9 + $0x10] sm:$0xff]  ;;  %v1263_v34 = vld [vmem:[#allocation9 + $0x18] sm:$0xff] }
0x12b5   :  { %3107 = vtanh.f32 %v1009_v35 }
0x12bf   :  { %v3108_v36 = vpop.eup %3107 }
0x12c0   :  { %1012 = vrot.lane.b32.xlu0 %v3108_v36, %s3308_s2  ;;  %v3684_v36 = vpack.c.bf16 %v1263_v34, %v1262_v33 }
0x1332   :  { %v1013_v37 = vpop.permute.xlu0 %1012 }
0x1333   :  { %v1015_v38 = vmul.f32 %v3106_v30, %v1013_v37  ;;  %v3677_v30 = vpack.c.bf16 %v1261_v29, %v1260_v28  ;;  %v1265_v37 = vld [vmem:[#allocation9 + $0x28] sm:$0xff] }
0x1335   :  { %1021 = vrot.lane.b32.xlu0 %v1015_v38, %s3309_s12  ;;  %1017 = vrot.lane.b32.xlu1 %v1015_v38, %s3310_s25 }
0x13a7   :  { %v1022_v39 = vpop.permute.xlu0 %1021  ;;  %v1018_v40 = vpop.permute.xlu1 %1017 }
0x13a8   :  { %1024 = vst.msk [vmem:[#allocation3] sm:$0xc] %vm323_vm8, %v1022_v39  ;;  %v1025_v41 = vsel %vm325_vm10, %v1018_v40, %v1022_v39  ;;  %v1266_v39 = vld [vmem:[#allocation9 + $0x30] sm:$0xff] }
0x13a9   :  { %1020 = vst.msk [vmem:[#allocation3 + $0xc] sm:$0x3] %vm318_vm9, %v1018_v40  ;;  %v1026_v42 = vmul.f32 %v3500_v58, %v1025_v41  ;;  %v1267_v40 = vld [vmem:[#allocation9 + $0x38] sm:$0xff] }
0x13aa   :  { %v3691_v41 = vpack.c.bf16 %v1267_v40, %v1266_v39 }
0x13ab   :  { %2642 = vmatmul.mubr.msk.f32.vlgmr.msra.gmra.mrb[10].mxu0 %vm215_vm11, %v1026_v42 }
0x13ac   :  { %2660 = vmatprep.mubr.msk.f32.mxu0 %vm3307_vm0, %v3305_v0  ;;  %2933 = vmatpush3.bf16.msra.mxu0 %v3677_v30 }
0x13ad   :  { %2934 = vmatprep.subr.bf16.mxu0 %v3306_v1 }
0x13b0   :  { %2936 = vmatpush3.bf16.msra.mxu0 %v3684_v36 }
0x13b1   :  { %2937 = vmatprep.subr.bf16.mxu0 %v3306_v1 }
0x147e   :  { %v1105_v48 = vpop.f32.mrb[10].mxu0 }
0x147f   :  { %v1109_v49 = vadd.f32 %v1105_v48, %v1035_v47  ;;  %v2643_v50 = vpop.f32.mrb[11].mxu0  ;;  %v1161_v48 = vld [vmem:[#allocation7] sm:$0x3] }
0x1480   :  { %v1170_v50 = vrot.slane %v1161_v48, %v108_v26 }
0x1481   :  { %3109 = vtanh.f32 %v1109_v49  ;;  %v2319_v52 = vmul.f32 -1.442695, %v1109_v49  ;;  %v1166_v49 = vrot.slane %v1161_v48, %v104_v24 }
0x1483   :  { %3111 = vpow2.f32 %v2319_v52 }
0x148b   :  { %v3110_v51 = vpop.eup %3109 }
0x148c   :  { %1119 = vrot.lane.b32.xlu1 %v3110_v51, %s3308_s2 }
0x148d   :  { %v3112_v53 = vpop.eup %3111 }
0x148e   :  { %v1113_v11 = vadd.f32 1.0, %v3112_v53 }
0x1490   :  { %3113 = vrcp.f32 %v1113_v11 }
0x149a   :  { %v3114_v54 = vpop.eup %3113 }
0x149b   :  { %v1117_v57 = vmul.f32 %v3114_v54, %v1009_v35  ;;  %v1264_v35 = vld [vmem:[#allocation9 + $0x20] sm:$0xff] }
0x149c   :  { %v3687_v38 = vpack.c.bf16 %v1265_v37, %v1264_v35 }
0x149e   :  { %2939 = vmatpush3.bf16.msra.mxu0 %v3687_v38 }
0x149f   :  { %2940 = vmatprep.subr.bf16.mxu0 %v3306_v1 }
0x14a2   :  { %2942 = vmatpush3.bf16.msra.mxu0 %v3691_v41 }
0x14a3   :  { %2955 = vmatprep.subr.bf16.mxu0 %v3306_v1 }
0x14a5   :  { %2661 = vmatmul.mubr.f32.vlgmr.msra.gmra.mrb[12].mxu0 %v3305_v0 }
0x14a6   :  { %2957 = vmatpush3.bf16.msra.mxu0 %v3677_v30  ;;  %2698 = vmatprep.mubr.msk.f32.mxu0 %vm3307_vm0, %v3305_v0 }
0x14a7   :  { %2958 = vmatprep.subr.bf16.mxu0 %v3306_v1 }
0x14aa   :  { %2960 = vmatpush3.bf16.msra.mxu0 %v3684_v36 }
0x14ab   :  { %2961 = vmatprep.subr.bf16.mxu0 %v3306_v1 }
0x14ae   :  { %2963 = vmatpush3.bf16.msra.mxu0 %v3687_v38 }
0x14af   :  { %2964 = vmatprep.subr.bf16.mxu0 %v3306_v1 }
0x14b2   :  { %2966 = vmatpush3.bf16.msra.mxu0 %v3691_v41 }
0x14b3   :  { %2979 = vmatprep.subr.bf16.mxu0 %v3306_v1 }
0x14fe   :  { %v1120_v55 = vpop.permute.xlu1 %1119 }
0x14ff   :  { %v1122_v56 = vmul.f32 %v3114_v54, %v1120_v55 }
0x1501   :  { %1124 = vrot.lane.b32.xlu0 %v1122_v56, %s3308_s2 }
0x1573   :  { %v1125_v59 = vpop.permute.xlu0 %1124 }
0x1574   :  { %v1127_v14 = vadd.f32 %v1125_v59, %v1117_v57 }
0x1576   :  { %3115 = vtanh.f32 %v1127_v14 }
0x1578   :  { %v1340_v46 = vpop.f32.mrb[12].mxu0 }
0x1579   :  { %v2662_v47 = vpop.f32.mrb[13].mxu0 }
0x1580   :  { %v3116_v8 = vpop.eup %3115 }
0x1581   :  { %1130 = vrot.lane.b32.xlu1 %v3116_v8, %s3308_s2 }
0x15f3   :  { %v1131_v31 = vpop.permute.xlu1 %1130 }
0x15f4   :  { %v1133_v32 = vmul.f32 %v3114_v54, %v1131_v31 }
0x15f6   :  { %1135 = vrot.lane.b32.xlu1 %v1133_v32, %s3310_s25  ;;  %1139 = vrot.lane.b32.xlu0 %v1133_v32, %s3309_s12 }
0x1668   :  { %v1136_v42 = vpop.permute.xlu1 %1135  ;;  %v1140_v43 = vpop.permute.xlu0 %1139 }
0x1669   :  { %1138 = vst.msk [vmem:[#allocation3 + $0xe] sm:$0x3] %vm318_vm9, %v1136_v42 }
0x166a   :  { %1142 = vst.msk [vmem:[#allocation3 - $0x2] sm:$0xc] %vm323_vm8, %v1140_v43 }
0x1670   :  { %v1144_v45 = vld [vmem:[#allocation3 + $0x8] sm:$0xff] }
0x1671   :  { %v1143_v44 = vld [vmem:[#allocation3] sm:$0xff] }
0x1672   :  { %2320 = vmatmul.mubr.msk.f32.vlgmr.msra.gmra.mrb[8].mxu1 %vm215_vm11, %v1143_v44 }
0x1673   :  { %1249 = vmatprep.mubr.f32.mxu1 %v3305_v0  ;;  %2945 = vmatpush3.bf16.msra.mxu1 %v3677_v30 }
0x1674   :  { %2946 = vmatprep.subr.bf16.mxu1 %v3306_v1 }
0x1676   :  { %2321 = vmatmul.mubr.msk.f32.gmra.mrb[10].mxu1 %vm215_vm11, %v1144_v45 }
0x1677   :  { %2948 = vmatpush3.bf16.msra.mxu1 %v3684_v36  ;;  %2679 = vmatprep.mubr.msk.f32.mxu1 %vm3307_vm0, %v3305_v0 }
0x1678   :  { %2949 = vmatprep.subr.bf16.mxu1 %v3306_v1 }
0x167b   :  { %2951 = vmatpush3.bf16.msra.mxu1 %v3687_v38 }
0x167c   :  { %2952 = vmatprep.subr.bf16.mxu1 %v3306_v1 }
0x167f   :  { %2954 = vmatpush3.bf16.msra.mxu1 %v3691_v41 }
0x1680   :  { %2967 = vmatprep.subr.bf16.mxu1 %v3306_v1 }
0x1745   :  { %v1245_v51 = vpop.f32.mrb[8].mxu1 }
0x1746   :  { %v1246_v52 = vadd.f32 %v1245_v51, %v1166_v49  ;;  %v1247_v53 = vpop.f32.mrb[9].mxu1 }
0x1747   :  { %v1248_v11 = vadd.f32 %v1247_v53, %v1170_v50 }
0x1748   :  { %1256 = vst [vmem:[#allocation2] sm:$0xff] %v1246_v52 }
0x1749   :  { %1257 = vst [vmem:[#allocation2 + $0x8] sm:$0xff] %v1248_v11  ;;  %v1251_v54 = vpop.f32.mrb[10].mxu1 }
0x174a   :  { %v1252_v55 = vadd.f32 %v1251_v54, %v1166_v49  ;;  %v1253_v56 = vpop.f32.mrb[11].mxu1 }
0x174b   :  { %v1254_v57 = vadd.f32 %v1253_v56, %v1170_v50 }
0x174c   :  { %1258 = vst [vmem:[#allocation2 + $0x10] sm:$0xff] %v1252_v55 }
0x174d   :  { %1259 = vst [vmem:[#allocation2 + $0x18] sm:$0xff] %v1254_v57 }
0x174f   :  { %v1268_v18 = vld [vmem:[#allocation2] sm:$0x3]  ;;  %v1380_v16 = vld [vmem:[#allocation2] sm:$0xc]  ;;  %v1498_v49 = vld [vmem:[#allocation2] sm:$0x30] }
0x1750   :  { %v1383_v19 = vrot.slane %v1380_v16, 2  ;;  %v1501_v51 = vrot.slane %v1498_v49, 4 }
0x1754   :  { %v1269_v59 = vld [vmem:[#allocation2 + $0x18] sm:$0xc0]  ;;  %v1381_v15 = vld [vmem:[#allocation2 + $0x18] sm:$0x30]  ;;  %v1499_v50 = vld [vmem:[#allocation2 + $0x18] sm:$0xc] }
0x1755   :  { %v1271_v14 = vrot.slane %v1269_v59, 4  ;;  %v1386_v17 = vrot.slane %v1381_v15, 2  ;;  %v1503_v52 = vsel %vm213_vm2, %v1501_v51, %v1499_v50 }
0x1757   :  { %v1273_v24 = vsel %vm213_vm2, %v1268_v18, %v1271_v14  ;;  %v1388_v20 = vsel %vm213_vm2, %v1383_v19, %v1386_v17 }
0x1758   :  { %v1344_v60 = vadd.f32 %v1340_v46, %v1273_v24 }
0x175a   :  { %3117 = vtanh.f32 %v1344_v60  ;;  %v2322_v26 = vmul.f32 -1.442695, %v1344_v60 }
0x175c   :  { %3119 = vpow2.f32 %v2322_v26 }
0x1764   :  { %v3118_v23 = vpop.eup %3117 }
0x1765   :  { %1354 = vrot.lane.b32.xlu0 %v3118_v23, %s3308_s2 }
0x1766   :  { %v3120_v61 = vpop.eup %3119 }
0x1767   :  { %v1348_v21 = vadd.f32 1.0, %v3120_v61 }
0x1769   :  { %3121 = vrcp.f32 %v1348_v21 }
0x1773   :  { %v3122_v62 = vpop.eup %3121 }
0x1774   :  { %v1352_v3 = vmul.f32 0.0, %v3122_v62 }
0x17d7   :  { %v1355_v63 = vpop.permute.xlu0 %1354 }
0x17d8   :  { %v1357_v2 = vmul.f32 %v3122_v62, %v1355_v63 }
0x17da   :  { %1359 = vrot.lane.b32.xlu1 %v1357_v2, %s3308_s2 }
0x184c   :  { %v1360_v4 = vpop.permute.xlu1 %1359 }
0x184d   :  { %v1362_v5 = vadd.f32 %v1360_v4, %v1352_v3 }
0x184f   :  { %3123 = vtanh.f32 %v1362_v5 }
0x1859   :  { %v3124_v6 = vpop.eup %3123 }
0x185a   :  { %1365 = vrot.lane.b32.xlu0 %v3124_v6, %s3308_s2  ;;  %v1613_v6 = vld [vmem:[#allocation2] sm:$0xc0] }
0x18cc   :  { %v1366_v7 = vpop.permute.xlu0 %1365 }
0x18cd   :  { %v1368_v8 = vmul.f32 %v3122_v62, %v1366_v7 }
0x18cf   :  { %1374 = vrot.lane.b32.xlu0 %v1368_v8, %s3309_s12  ;;  %1370 = vrot.lane.b32.xlu1 %v1368_v8, %s3310_s25  ;;  %v1616_v8 = vrot.slane %v1613_v6, 6 }
0x1941   :  { %v1375_v9 = vpop.permute.xlu0 %1374  ;;  %v1371_v10 = vpop.permute.xlu1 %1370 }
0x1942   :  { %1377 = vst.msk [vmem:[#allocation3 + $0xc] sm:$0xc] %vm323_vm8, %v1375_v9  ;;  %v1378_v12 = vsel %vm325_vm10, %v1371_v10, %v1375_v9 }
0x1943   :  { %1373 = vst.msk [vmem:[#allocation3] sm:$0x3] %vm318_vm9, %v1371_v10  ;;  %v1379_v13 = vmul.f32 %v3500_v58, %v1378_v12 }
0x1945   :  { %2680 = vmatmul.mubr.msk.f32.vlgmr.msra.gmra.mrb[12].mxu1 %vm215_vm11, %v1379_v13 }
0x1946   :  { %2969 = vmatpush3.bf16.msra.mxu1 %v3677_v30  ;;  %2717 = vmatprep.mubr.msk.f32.mxu1 %vm3307_vm0, %v3305_v0 }
0x1947   :  { %2970 = vmatprep.subr.bf16.mxu1 %v3306_v1 }
0x194a   :  { %2972 = vmatpush3.bf16.msra.mxu1 %v3684_v36 }
0x194b   :  { %2973 = vmatprep.subr.bf16.mxu1 %v3306_v1 }
0x194e   :  { %2975 = vmatpush3.bf16.msra.mxu1 %v3687_v38 }
0x194f   :  { %2976 = vmatprep.subr.bf16.mxu1 %v3306_v1 }
0x1952   :  { %2978 = vmatpush3.bf16.msra.mxu1 %v3691_v41 }
0x1953   :  { %2991 = vmatprep.subr.bf16.mxu1 %v3306_v1 }
0x1a18   :  { %v1458_v22 = vpop.f32.mrb[12].mxu1 }
0x1a19   :  { %v1462_v25 = vadd.f32 %v1458_v22, %v1388_v20  ;;  %v2681_v27 = vpop.f32.mrb[13].mxu1 }
0x1a1b   :  { %3125 = vtanh.f32 %v1462_v25  ;;  %v2324_v29 = vmul.f32 -1.442695, %v1462_v25 }
0x1a1d   :  { %3127 = vpow2.f32 %v2324_v29 }
0x1a25   :  { %v3126_v28 = vpop.eup %3125 }
0x1a26   :  { %1472 = vrot.lane.b32.xlu1 %v3126_v28, %s3308_s2 }
0x1a27   :  { %v3128_v31 = vpop.eup %3127 }
0x1a28   :  { %v1466_v32 = vadd.f32 1.0, %v3128_v31 }
0x1a2a   :  { %3129 = vrcp.f32 %v1466_v32 }
0x1a34   :  { %v3130_v33 = vpop.eup %3129 }
0x1a35   :  { %v1470_v37 = vmul.f32 %v3130_v33, %v1362_v5  ;;  %v1614_v5 = vld [vmem:[#allocation2 + $0x18] sm:$0x3] }
0x1a36   :  { %v1619_v7 = vrot.slane %v1614_v5, 6 }
0x1a38   :  { %v1621_v9 = vsel %vm213_vm2, %v1616_v8, %v1619_v7 }
0x1a98   :  { %v1473_v34 = vpop.permute.xlu1 %1472 }
0x1a99   :  { %v1475_v35 = vmul.f32 %v3130_v33, %v1473_v34 }
0x1a9b   :  { %1477 = vrot.lane.b32.xlu0 %v1475_v35, %s3308_s2 }
0x1b0d   :  { %v1478_v39 = vpop.permute.xlu0 %1477 }
0x1b0e   :  { %v1480_v40 = vadd.f32 %v1478_v39, %v1470_v37 }
0x1b10   :  { %3131 = vtanh.f32 %v1480_v40 }
0x1b1a   :  { %v3132_v42 = vpop.eup %3131 }
0x1b1b   :  { %1483 = vrot.lane.b32.xlu1 %v3132_v42, %s3308_s2 }
0x1b8d   :  { %v1484_v43 = vpop.permute.xlu1 %1483 }
0x1b8e   :  { %v1486_v44 = vmul.f32 %v3130_v33, %v1484_v43  ;;  %v1731_v43 = vld [vmem:[#allocation2 + $0x10] sm:$0x3] }
0x1b90   :  { %1492 = vrot.lane.b32.xlu1 %v1486_v44, %s3309_s12  ;;  %1488 = vrot.lane.b32.xlu0 %v1486_v44, %s3310_s25 }
0x1c02   :  { %v1493_v45 = vpop.permute.xlu1 %1492  ;;  %v1489_v46 = vpop.permute.xlu0 %1488 }
0x1c03   :  { %1495 = vst.msk [vmem:[#allocation3 + $0xa] sm:$0xc] %vm323_vm8, %v1493_v45  ;;  %v1496_v47 = vsel %vm325_vm10, %v1489_v46, %v1493_v45 }
0x1c04   :  { %1491 = vst.msk [vmem:[#allocation3 + $0x2] sm:$0x3] %vm318_vm9, %v1489_v46  ;;  %v1497_v48 = vmul.f32 %v3500_v58, %v1496_v47 }
0x1c06   :  { %2699 = vmatmul.mubr.msk.f32.vlgmr.msra.gmra.mrb[14].mxu0 %vm215_vm11, %v1497_v48 }
0x1c07   :  { %2981 = vmatpush3.bf16.msra.mxu0 %v3677_v30  ;;  %2736 = vmatprep.mubr.msk.f32.mxu0 %vm3307_vm0, %v3305_v0 }
0x1c08   :  { %2982 = vmatprep.subr.bf16.mxu0 %v3306_v1 }
0x1c0b   :  { %2984 = vmatpush3.bf16.msra.mxu0 %v3684_v36 }
0x1c0c   :  { %2985 = vmatprep.subr.bf16.mxu0 %v3306_v1 }
0x1c0f   :  { %2987 = vmatpush3.bf16.msra.mxu0 %v3687_v38 }
0x1c10   :  { %2988 = vmatprep.subr.bf16.mxu0 %v3306_v1 }
0x1c13   :  { %2990 = vmatpush3.bf16.msra.mxu0 %v3691_v41 }
0x1c14   :  { %3003 = vmatprep.subr.bf16.mxu0 %v3306_v1 }
0x1cd9   :  { %v1573_v53 = vpop.f32.mrb[14].mxu0 }
0x1cda   :  { %v1577_v11 = vadd.f32 %v1573_v53, %v1503_v52  ;;  %v2700_v54 = vpop.f32.mrb[15].mxu0 }
0x1cdc   :  { %3133 = vtanh.f32 %v1577_v11  ;;  %v2326_v56 = vmul.f32 -1.442695, %v1577_v11 }
0x1cde   :  { %3135 = vpow2.f32 %v2326_v56 }
0x1ce6   :  { %v3134_v55 = vpop.eup %3133 }
0x1ce7   :  { %1587 = vrot.lane.b32.xlu0 %v3134_v55, %s3308_s2 }
0x1ce8   :  { %v3136_v57 = vpop.eup %3135 }
0x1ce9   :  { %v1581_v59 = vadd.f32 1.0, %v3136_v57 }
0x1ceb   :  { %3137 = vrcp.f32 %v1581_v59 }
0x1cf5   :  { %v3138_v14 = vpop.eup %3137 }
0x1cf6   :  { %v1585_v60 = vmul.f32 %v3138_v14, %v1480_v40  ;;  %v1732_v40 = vld [vmem:[#allocation2 + $0x8] sm:$0xc0] }
0x1cf7   :  { %v1734_v42 = vrot.slane %v1732_v40, 4 }
0x1cf9   :  { %v1736_v44 = vsel %vm213_vm2, %v1731_v43, %v1734_v42 }
0x1d59   :  { %v1588_v18 = vpop.permute.xlu0 %1587 }
0x1d5a   :  { %v1590_v24 = vmul.f32 %v3138_v14, %v1588_v18 }
0x1d5c   :  { %1592 = vrot.lane.b32.xlu1 %v1590_v24, %s3308_s2 }
0x1dce   :  { %v1593_v23 = vpop.permute.xlu1 %1592 }
0x1dcf   :  { %v1595_v26 = vadd.f32 %v1593_v23, %v1585_v60 }
0x1dd1   :  { %3139 = vtanh.f32 %v1595_v26 }
0x1ddb   :  { %v3140_v61 = vpop.eup %3139 }
0x1ddc   :  { %1598 = vrot.lane.b32.xlu0 %v3140_v61, %s3308_s2  ;;  %v1847_v61 = vld [vmem:[#allocation2 + $0x8] sm:$0x30] }
0x1e4e   :  { %v1599_v21 = vpop.permute.xlu0 %1598 }
0x1e4f   :  { %v1601_v62 = vmul.f32 %v3138_v14, %v1599_v21 }
0x1e51   :  { %1607 = vrot.lane.b32.xlu0 %v1601_v62, %s3309_s12  ;;  %1603 = vrot.lane.b32.xlu1 %v1601_v62, %s3310_s25  ;;  %v1852_v62 = vrot.slane %v1847_v61, 2 }
0x1ec3   :  { %v1608_v63 = vpop.permute.xlu0 %1607  ;;  %v1604_v2 = vpop.permute.xlu1 %1603 }
0x1ec4   :  { %1610 = vst.msk [vmem:[#allocation3 + $0x8] sm:$0xc] %vm323_vm8, %v1608_v63  ;;  %v1611_v3 = vsel %vm325_vm10, %v1604_v2, %v1608_v63 }
0x1ec5   :  { %1606 = vst.msk [vmem:[#allocation3 + $0x4] sm:$0x3] %vm318_vm9, %v1604_v2  ;;  %v1612_v4 = vmul.f32 %v3500_v58, %v1611_v3 }
0x1ec7   :  { %2718 = vmatmul.mubr.msk.f32.vlgmr.msra.gmra.mrb[14].mxu1 %vm215_vm11, %v1612_v4 }
0x1ec8   :  { %2993 = vmatpush3.bf16.msra.mxu1 %v3677_v30  ;;  %2755 = vmatprep.mubr.msk.f32.mxu1 %vm3307_vm0, %v3305_v0 }
0x1ec9   :  { %2994 = vmatprep.subr.bf16.mxu1 %v3306_v1 }
0x1ecc   :  { %2996 = vmatpush3.bf16.msra.mxu1 %v3684_v36 }
0x1ecd   :  { %2997 = vmatprep.subr.bf16.mxu1 %v3306_v1 }
0x1ed0   :  { %2999 = vmatpush3.bf16.msra.mxu1 %v3687_v38 }
0x1ed1   :  { %3000 = vmatprep.subr.bf16.mxu1 %v3306_v1 }
0x1ed4   :  { %3002 = vmatpush3.bf16.msra.mxu1 %v3691_v41 }
0x1ed5   :  { %3015 = vmatprep.subr.bf16.mxu1 %v3306_v1 }
0x1f9a   :  { %v1691_v10 = vpop.f32.mrb[14].mxu1 }
0x1f9b   :  { %v1695_v12 = vadd.f32 %v1691_v10, %v1621_v9  ;;  %v2719_v13 = vpop.f32.mrb[15].mxu1 }
0x1f9d   :  { %3141 = vtanh.f32 %v1695_v12  ;;  %v2328_v16 = vmul.f32 -1.442695, %v1695_v12 }
0x1f9f   :  { %3143 = vpow2.f32 %v2328_v16 }
0x1fa7   :  { %v3142_v15 = vpop.eup %3141 }
0x1fa8   :  { %1705 = vrot.lane.b32.xlu1 %v3142_v15, %s3308_s2 }
0x1fa9   :  { %v3144_v17 = vpop.eup %3143 }
0x1faa   :  { %v1699_v19 = vadd.f32 1.0, %v3144_v17 }
0x1fac   :  { %3145 = vrcp.f32 %v1699_v19 }
0x1fb6   :  { %v3146_v20 = vpop.eup %3145 }
0x1fb7   :  { %v1703_v27 = vmul.f32 %v3146_v20, %v1595_v26  ;;  %v1846_v26 = vld [vmem:[#allocation2 + $0x10] sm:$0xc] }
0x1fb8   :  { %v1849_v21 = vrot.slane %v1846_v26, 2 }
0x201a   :  { %v1706_v22 = vpop.permute.xlu1 %1705 }
0x201b   :  { %v1708_v25 = vmul.f32 %v3146_v20, %v1706_v22  ;;  %v1964_v22 = vld [vmem:[#allocation2 + $0x10] sm:$0x30] }
0x201d   :  { %1710 = vrot.lane.b32.xlu0 %v1708_v25, %s3308_s2  ;;  %v1967_v25 = vrot.slane %v1964_v22, 4 }
0x208f   :  { %v1711_v28 = vpop.permute.xlu0 %1710 }
0x2090   :  { %v1713_v29 = vadd.f32 %v1711_v28, %v1703_v27  ;;  %v1965_v27 = vld [vmem:[#allocation2 + $0x8] sm:$0xc] }
0x2091   :  { %v1969_v28 = vsel %vm213_vm2, %v1967_v25, %v1965_v27 }
0x2092   :  { %3147 = vtanh.f32 %v1713_v29 }
0x209c   :  { %v3148_v31 = vpop.eup %3147 }
0x209d   :  { %1716 = vrot.lane.b32.xlu1 %v3148_v31, %s3308_s2 }
0x210f   :  { %v1717_v32 = vpop.permute.xlu1 %1716 }
0x2110   :  { %v1719_v33 = vmul.f32 %v3146_v20, %v1717_v32 }
0x2112   :  { %1725 = vrot.lane.b32.xlu1 %v1719_v33, %s3309_s12  ;;  %1721 = vrot.lane.b32.xlu0 %v1719_v33, %s3310_s25 }
0x2184   :  { %v1726_v34 = vpop.permute.xlu1 %1725  ;;  %v1722_v35 = vpop.permute.xlu0 %1721 }
0x2185   :  { %1728 = vst.msk [vmem:[#allocation3 + $0x6] sm:$0xc] %vm323_vm8, %v1726_v34  ;;  %v1729_v37 = vsel %vm325_vm10, %v1722_v35, %v1726_v34 }
0x2186   :  { %1724 = vst.msk [vmem:[#allocation3 + $0x6] sm:$0x3] %vm318_vm9, %v1722_v35  ;;  %v1730_v39 = vmul.f32 %v3500_v58, %v1729_v37 }
0x2188   :  { %2737 = vmatmul.mubr.msk.f32.vlgmr.msra.gmra.mrb[16].mxu0 %vm215_vm11, %v1730_v39 }
0x2189   :  { %3005 = vmatpush3.bf16.msra.mxu0 %v3677_v30  ;;  %2774 = vmatprep.mubr.msk.f32.mxu0 %vm3307_vm0, %v3305_v0 }
0x218a   :  { %3006 = vmatprep.subr.bf16.mxu0 %v3306_v1 }
0x218d   :  { %3008 = vmatpush3.bf16.msra.mxu0 %v3684_v36 }
0x218e   :  { %3009 = vmatprep.subr.bf16.mxu0 %v3306_v1 }
0x2191   :  { %3011 = vmatpush3.bf16.msra.mxu0 %v3687_v38 }
0x2192   :  { %3012 = vmatprep.subr.bf16.mxu0 %v3306_v1 }
0x2195   :  { %3014 = vmatpush3.bf16.msra.mxu0 %v3691_v41 }
0x2196   :  { %3027 = vmatprep.subr.bf16.mxu0 %v3306_v1 }
0x225b   :  { %v1806_v45 = vpop.f32.mrb[16].mxu0 }
0x225c   :  { %v1810_v46 = vadd.f32 %v1806_v45, %v1736_v44  ;;  %v2738_v47 = vpop.f32.mrb[17].mxu0 }
0x225e   :  { %3149 = vtanh.f32 %v1810_v46  ;;  %v2330_v49 = vmul.f32 -1.442695, %v1810_v46 }
0x2260   :  { %3151 = vpow2.f32 %v2330_v49 }
0x2268   :  { %v3150_v48 = vpop.eup %3149 }
0x2269   :  { %1820 = vrot.lane.b32.xlu0 %v3150_v48, %s3308_s2 }
0x226a   :  { %v3152_v50 = vpop.eup %3151 }
0x226b   :  { %v1814_v51 = vadd.f32 1.0, %v3152_v50 }
0x226d   :  { %3153 = vrcp.f32 %v1814_v51 }
0x2277   :  { %v3154_v52 = vpop.eup %3153 }
0x2278   :  { %v1818_v54 = vmul.f32 %v3154_v52, %v1713_v29 }
0x22db   :  { %v1821_v53 = vpop.permute.xlu0 %1820 }
0x22dc   :  { %v1823_v11 = vmul.f32 %v3154_v52, %v1821_v53  ;;  %v2080_v53 = vld [vmem:[#allocation2 + $0x8] sm:$0x3] }
0x22de   :  { %1825 = vrot.lane.b32.xlu1 %v1823_v11, %s3308_s2 }
0x2350   :  { %v1826_v55 = vpop.permute.xlu1 %1825 }
0x2351   :  { %v1828_v56 = vadd.f32 %v1826_v55, %v1818_v54  ;;  %v2085_v54 = vrot.slane %v2080_v53, 6 }
0x2353   :  { %3155 = vtanh.f32 %v1828_v56 }
0x235d   :  { %v3156_v57 = vpop.eup %3155 }
0x235e   :  { %1831 = vrot.lane.b32.xlu0 %v3156_v57, %s3308_s2 }
0x23d0   :  { %v1832_v59 = vpop.permute.xlu0 %1831 }
0x23d1   :  { %v1834_v14 = vmul.f32 %v3154_v52, %v1832_v59  ;;  %v2079_v52 = vld [vmem:[#allocation2 + $0x10] sm:$0xc0] }
0x23d2   :  { %v2082_v11 = vrot.slane %v2079_v52, 6 }
0x23d3   :  { %1840 = vrot.lane.b32.xlu0 %v1834_v14, %s3309_s12  ;;  %1836 = vrot.lane.b32.xlu1 %v1834_v14, %s3310_s25 }
0x23d4   :  { %v2087_v55 = vsel %vm213_vm2, %v2082_v11, %v2085_v54 }
0x2445   :  { %v1841_v18 = vpop.permute.xlu0 %1840  ;;  %v1837_v24 = vpop.permute.xlu1 %1836 }
0x2446   :  { %1843 = vst.msk [vmem:[#allocation3 + $0x4] sm:$0xc] %vm323_vm8, %v1841_v18  ;;  %v1844_v60 = vsel %vm325_vm10, %v1837_v24, %v1841_v18 }
0x2447   :  { %1839 = vst.msk [vmem:[#allocation3 + $0x8] sm:$0x3] %vm318_vm9, %v1837_v24  ;;  %v1845_v23 = vmul.f32 %v3500_v58, %v1844_v60 }
0x2449   :  { %2756 = vmatmul.mubr.msk.f32.vlgmr.msra.gmra.mrb[16].mxu1 %vm215_vm11, %v1845_v23 }
0x244a   :  { %3017 = vmatpush3.bf16.msra.mxu1 %v3677_v30  ;;  %2793 = vmatprep.mubr.msk.f32.mxu1 %vm3307_vm0, %v3305_v0  ;;  %v1854_v30 = vsel %vm213_vm2, %v1849_v21, %v1852_v62 }
0x244b   :  { %3018 = vmatprep.subr.bf16.mxu1 %v3306_v1 }
0x244e   :  { %3020 = vmatpush3.bf16.msra.mxu1 %v3684_v36 }
0x244f   :  { %3021 = vmatprep.subr.bf16.mxu1 %v3306_v1 }
0x2452   :  { %3023 = vmatpush3.bf16.msra.mxu1 %v3687_v38 }
0x2453   :  { %3024 = vmatprep.subr.bf16.mxu1 %v3306_v1 }
0x2456   :  { %3026 = vmatpush3.bf16.msra.mxu1 %v3691_v41 }
0x251c   :  { %v1924_v63 = vpop.f32.mrb[16].mxu1 }
0x251d   :  { %v1928_v2 = vadd.f32 %v1924_v63, %v1854_v30  ;;  %v2757_v3 = vpop.f32.mrb[17].mxu1  ;;  %v2196_v30 = vld [vmem:[%s3910_s7] sm:$0xff]  ;;  %v2197_v63 = vld [vmem:[%s3910_s7 + $0x8] sm:$0xff] }
0x251e   :  { %v3028_v3 = vpack.c.bf16 %v2197_v63, %v2196_v30 }
0x251f   :  { %3157 = vtanh.f32 %v1928_v2  ;;  %v2332_v36 = vmul.f32 -1.442695, %v1928_v2  ;;  %v2198_v2 = vld [vmem:[%s3910_s7 + $0x10] sm:$0xff] }
0x2521   :  { %3159 = vpow2.f32 %v2332_v36 }
0x2529   :  { %v3158_v4 = vpop.eup %3157 }
0x252a   :  { %1938 = vrot.lane.b32.xlu1 %v3158_v4, %s3308_s2  ;;  %v2199_v4 = vld [vmem:[%s3910_s7 + $0x18] sm:$0xff] }
0x252b   :  { %v3160_v38 = vpop.eup %3159  ;;  %v3031_v36 = vpack.c.bf16 %v2199_v4, %v2198_v2 }
0x252c   :  { %v1932_v5 = vadd.f32 1.0, %v3160_v38 }
0x252e   :  { %3161 = vrcp.f32 %v1932_v5  ;;  %v2200_v5 = vld [vmem:[%s3910_s7 + $0x20] sm:$0xff] }
0x2538   :  { %v3162_v6 = vpop.eup %3161 }
0x2539   :  { %v1936_v8 = vmul.f32 %v3162_v6, %v1828_v56 }
0x259c   :  { %v1939_v41 = vpop.permute.xlu1 %1938 }
0x259d   :  { %v1941_v7 = vmul.f32 %v3162_v6, %v1939_v41  ;;  %v2202_v41 = vld [vmem:[%s3910_s7 + $0x30] sm:$0xff] }
0x259f   :  { %1943 = vrot.lane.b32.xlu0 %v1941_v7, %s3308_s2 }
0x2611   :  { %v1944_v9 = vpop.permute.xlu0 %1943 }
0x2612   :  { %v1946_v10 = vadd.f32 %v1944_v9, %v1936_v8  ;;  %v2203_v8 = vld [vmem:[%s3910_s7 + $0x38] sm:$0xff] }
0x2613   :  { %v3037_v9 = vpack.c.bf16 %v2203_v8, %v2202_v41 }
0x2614   :  { %3163 = vtanh.f32 %v1946_v10 }
0x261e   :  { %v3164_v12 = vpop.eup %3163 }
0x261f   :  { %1949 = vrot.lane.b32.xlu1 %v3164_v12, %s3308_s2 }
0x2691   :  { %v1950_v13 = vpop.permute.xlu1 %1949 }
0x2692   :  { %v1952_v15 = vmul.f32 %v3162_v6, %v1950_v13  ;;  %v2201_v6 = vld [vmem:[%s3910_s7 + $0x28] sm:$0xff]  ;;  %s3312_s7 = smov [#allocation12]  }
0x2693   :  { %v3034_v7 = vpack.c.bf16 %v2201_v6, %v2200_v5 }
0x2694   :  { %1958 = vrot.lane.b32.xlu1 %v1952_v15, %s3309_s12  ;;  %1954 = vrot.lane.b32.xlu0 %v1952_v15, %s3310_s25 }
0x2706   :  { %v1959_v16 = vpop.permute.xlu1 %1958  ;;  %v1955_v17 = vpop.permute.xlu0 %1954 }
0x2707   :  { %1961 = vst.msk [vmem:[#allocation3 + $0x2] sm:$0xc] %vm323_vm8, %v1959_v16  ;;  %v1962_v19 = vsel %vm325_vm10, %v1955_v17, %v1959_v16 }
0x2708   :  { %1957 = vst.msk [vmem:[#allocation3 + $0xa] sm:$0x3] %vm318_vm9, %v1955_v17  ;;  %v1963_v20 = vmul.f32 %v3500_v58, %v1962_v19  ;;  %v2337_v17 = vld [vmem:[#allocation10] ss:$0 sm:$0xff] }
0x270a   :  { %2775 = vmatmul.mubr.msk.f32.vlgmr.msra.gmra.mrb[18].mxu0 %vm215_vm11, %v1963_v20 }
0x270b   :  { %2812 = vmatprep.mubr.msk.f32.mxu0 %vm3307_vm0, %v3305_v0  ;;  %3029 = vmatpush3.bf16.msra.mxu0 %v3028_v3 }
0x270c   :  { %3030 = vmatprep.subr.bf16.mxu0 %v3306_v1 }
0x270f   :  { %3032 = vmatpush3.bf16.msra.mxu0 %v3031_v36 }
0x2710   :  { %3033 = vmatprep.subr.bf16.mxu0 %v3306_v1 }
0x2713   :  { %3035 = vmatpush3.bf16.msra.mxu0 %v3034_v7 }
0x2714   :  { %3036 = vmatprep.subr.bf16.mxu0 %v3306_v1 }
0x2717   :  { %3038 = vmatpush3.bf16.msra.mxu0 %v3037_v9 }
0x27dd   :  { %v2039_v29 = vpop.f32.mrb[18].mxu0 }
0x27de   :  { %v2043_v31 = vadd.f32 %v2039_v29, %v1969_v28  ;;  %v2776_v32 = vpop.f32.mrb[19].mxu0 }
0x27e0   :  { %3165 = vtanh.f32 %v2043_v31  ;;  %v2334_v34 = vmul.f32 -1.442695, %v2043_v31 }
0x27e2   :  { %3167 = vpow2.f32 %v2334_v34 }
0x27ea   :  { %v3166_v33 = vpop.eup %3165 }
0x27eb   :  { %2053 = vrot.lane.b32.xlu0 %v3166_v33, %s3308_s2 }
0x27ec   :  { %v3168_v35 = vpop.eup %3167 }
0x27ed   :  { %v2047_v37 = vadd.f32 1.0, %v3168_v35 }
0x27ef   :  { %3169 = vrcp.f32 %v2047_v37 }
0x27f9   :  { %v3170_v39 = vpop.eup %3169 }
0x27fa   :  { %v2051_v42 = vmul.f32 %v3170_v39, %v1946_v10 }
0x285d   :  { %v2054_v40 = vpop.permute.xlu0 %2053 }
0x285e   :  { %v2056_v0 = vmul.f32 %v3170_v39, %v2054_v40 }
0x2860   :  { %2058 = vrot.lane.b32.xlu1 %v2056_v0, %s3308_s2 }
0x28d2   :  { %v2059_v43 = vpop.permute.xlu1 %2058 }
0x28d3   :  { %v2061_v44 = vadd.f32 %v2059_v43, %v2051_v42 }
0x28d5   :  { %3171 = vtanh.f32 %v2061_v44 }
0x28df   :  { %v3172_v45 = vpop.eup %3171 }
0x28e0   :  { %2064 = vrot.lane.b32.xlu0 %v3172_v45, %s3308_s2 }
0x2952   :  { %v2065_v46 = vpop.permute.xlu0 %2064 }
0x2953   :  { %v2067_v47 = vmul.f32 %v3170_v39, %v2065_v46 }
0x2955   :  { %2073 = vrot.lane.b32.xlu0 %v2067_v47, %s3309_s12  ;;  %2069 = vrot.lane.b32.xlu1 %v2067_v47, %s3310_s25 }
0x29c7   :  { %v2074_v48 = vpop.permute.xlu0 %2073  ;;  %v2070_v49 = vpop.permute.xlu1 %2069 }
0x29c8   :  { %2076 = vst.msk [vmem:[#allocation3] sm:$0xc] %vm323_vm8, %v2074_v48  ;;  %v2077_v50 = vsel %vm325_vm10, %v2070_v49, %v2074_v48 }
0x29c9   :  { %2072 = vst.msk [vmem:[#allocation3 + $0xc] sm:$0x3] %vm318_vm9, %v2070_v49  ;;  %v2078_v51 = vmul.f32 %v3500_v58, %v2077_v50 }
0x29cb   :  { %2794 = vmatmul.mubr.msk.f32.vlgmr.msra.gmra.mrb[18].mxu1 %vm215_vm11, %v2078_v51 }
0x2a9e   :  { %v2157_v56 = vpop.f32.mrb[18].mxu1 }
0x2a9f   :  { %v2161_v57 = vadd.f32 %v2157_v56, %v2087_v55  ;;  %v2795_v59 = vpop.f32.mrb[19].mxu1 }
0x2aa1   :  { %3173 = vtanh.f32 %v2161_v57  ;;  %v2336_v18 = vmul.f32 -1.442695, %v2161_v57 }
0x2aa3   :  { %3175 = vpow2.f32 %v2336_v18 }
0x2aab   :  { %v3174_v14 = vpop.eup %3173 }
0x2aac   :  { %2171 = vrot.lane.b32.xlu1 %v3174_v14, %s3308_s2 }
0x2aad   :  { %v3176_v24 = vpop.eup %3175 }
0x2aae   :  { %v2165_v60 = vadd.f32 1.0, %v3176_v24 }
0x2ab0   :  { %3177 = vrcp.f32 %v2165_v60 }
0x2aba   :  { %v3178_v58 = vpop.eup %3177 }
0x2abb   :  { %v2169_v61 = vmul.f32 %v3178_v58, %v2061_v44 }
0x2b1e   :  { %v2172_v23 = vpop.permute.xlu1 %2171 }
0x2b1f   :  { %v2174_v26 = vmul.f32 %v3178_v58, %v2172_v23 }
0x2b21   :  { %2176 = vrot.lane.b32.xlu0 %v2174_v26, %s3308_s2 }
0x2b93   :  { %v2177_v21 = vpop.permute.xlu0 %2176 }
0x2b94   :  { %v2179_v62 = vadd.f32 %v2177_v21, %v2169_v61 }
0x2b96   :  { %3179 = vtanh.f32 %v2179_v62 }
0x2ba0   :  { %v3180_v38 = vpop.eup %3179 }
0x2ba1   :  { %2182 = vrot.lane.b32.xlu1 %v3180_v38, %s3308_s2  ;;  %s2291_s2 = sshll.u32 %s3312_s7, 4  ;;  %s2292_s2 = int_to_ptr.vmem [resolvable:$true] %s2291_s2 }
0x2ba2   :  { %p3274_p5 = scmp.lt.s32.totalorder %s2292_s2, %s2292_s2 }
0x2c13   :  { %v2183_v10 = vpop.permute.xlu1 %2182 }
0x2c14   :  { %v2185_v12 = vmul.f32 %v3178_v58, %v2183_v10 }
0x2c16   :  { %2191 = vrot.lane.b32.xlu1 %v2185_v12, %s3309_s12  ;;  %2187 = vrot.lane.b32.xlu0 %v2185_v12, %s3310_s25  ;;  %s3269_s12 = scalar_lea.vmem %s2292_s2, 32 }
0x2c17   :  { %p3270_p4 = scmp.ne.s32.totalorder %s2292_s2, %s3269_s12  ;;  %p3275_p6 = scmp.lt.s32.totalorder %s3269_s12, %s3269_s12 }
0x2c19   :  { %p3276_p7 = por %p3275_p6, %p3274_p5 }
0x2c1b   :  { %p3277_p8 = pnand %p3276_p7, %p3270_p4 }
0x2c88   :  { %v2192_v13 = vpop.permute.xlu1 %2191  ;;  %v2188_v15 = vpop.permute.xlu0 %2187 }
0x2c89   :  { %2194 = vst.msk [vmem:[#allocation3 - $0x2] sm:$0xc] %vm323_vm8, %v2192_v13 }
0x2c8a   :  { %2190 = vst.msk [vmem:[#allocation3 + $0xe] sm:$0x3] %vm318_vm9, %v2188_v15 }
0x2c91   :  { %v2195_v16 = vld [vmem:[#allocation3 + $0xe] sm:$0x3] }
0x2c92   :  { %2813 = vmatmul.mubr.msk.f32.vlgmr.msra.gmra.mrb[20].mxu0 %vm215_vm11, %v2195_v16 }
0x2d65   :  { %v2280_v1 = vpop.f32.mrb[20].mxu0 }
0x2d66   :  { %v2281_v19 = vadd.f32 %v2337_v17, %v2280_v1  ;;  %v2814_v20 = vpop.f32.mrb[21].mxu0 }
0x2d68   :  { %2284 = vst.msk [vmem:[#allocation12] sm:$0x3] %vm318_vm9, %v2281_v19 }
0x2d69   :  { %3280 = shalt.err (!%p3277_p8)
}
0x2d6a   :  { %s3281_s0 = scalar_lea.hbm %s3912_s9, 32 }
0x2d6b   :  { %p3282_p9 = scmp.ne.s32.totalorder %s3912_s9, %s3281_s0  ;;  %p3285_p10 = scmp.lt.u32.totalorder %s3281_s0, %s3912_s9 }
0x2d6d   :  { %p3287_p11 = pnand %p3285_p10, %p3282_p9 }
0x2d6f   :  { %3290 = shalt.err (!%p3287_p11)
}
0x2d70   :  { %2294 = dma.vmem_to_hbm [thread:$0]  %s2292_s2, 32, %s3912_s9, [#allocation6]  }
0x2d71   :  { %3297 = dma.done.wait [#allocation6], 32  }
0x2d72   :  { %3298 = vsyncadd [#allocation6], 4294967264 }
0x2d73   :  { %2298 = vsyncpa [#allocation5], 1 }
0x2d74   :  { %2299 = vsyncpa [#allocation8], 1 }
0x2d75   :  { %2300 = vsyncpa [#allocation11], 1 }
0x2d76   :  { %2301 = vsyncpa [#allocation6], 1 }

</bundles_post_ra>
